<compile_context>
chip_gen: v6e
topology: v6e:2x2x1
jax: 0.10.0
libtpu: 0.0.40
codegen_flags: <defaults>
</compile_context>

<pallas_src>
import jax
import jax.numpy as jnp
from jax import lax
from jax.experimental import pallas as pl
from jax.experimental.pallas import tpu as pltpu


def _round_up(x, m):
    return ((x + m - 1) // m) * m


def _ceil_div(a, b):
    return -(-a // b)


def _choose_tiles(N, H, W, Hp, Wp, K, Cin_p, Cout_p):
    """Pick (b_tile, b_sub, h_sub, cout_tile) from the shape + a v7x-safe VMEM budget."""
    HW = H * W

    # Cout tile: lane-dense (>=128) and <=256 so the per-sub-block f32 dot
    # result stays <= 32 vregs at ~128 rows.
    if Cout_p <= 256:
        cout_tile = Cout_p
    elif Cout_p % 256 == 0:
        cout_tile = 256
    else:
        cout_tile = 128

    # In-kernel M sub-block: ~128 rows per dot.
    r_target = 128
    if HW >= r_target:
        b_sub = 1
        h_cap = max(1, r_target // W)
        h_sub = max(d for d in range(1, H + 1) if H % d == 0 and d <= h_cap)
    else:
        h_sub = H
        b_sub = max(1, r_target // HW)
    R = b_sub * h_sub * W

    # Batch tile: target M ~= 1024 rows per grid step, capped by VMEM budget.
    kk_cin = K * K * Cin_p
    b_tile = _round_up(max(b_sub, _ceil_div(1024, HW)), b_sub)

    budget = 24 * 1024 * 1024            # v7x-safe share of 64 MiB/TC VMEM
    fixed = (2 * kk_cin * cout_tile * 2          # weights, double-buffered
             + 2 * 8 * cout_tile * 4             # shift, double-buffered
             + _round_up(R, 16) * kk_cin * 2)    # im2col scratch
    per_img = 2 * (Hp * _round_up(Wp, 16) * Cin_p * 2
                   + _round_up(HW, 16) * cout_tile * 2)
    b_vmem = max(b_sub, ((budget - fixed) // max(per_img, 1)) // b_sub * b_sub)
    b_tile = min(b_tile, b_vmem)

    # NOTE: no N//2 clamp -- on v5e/v6e the grid is a serial loop on one TC and
    # halving M only hurts.  For v7x with tiny N, pass an explicit b_tile.
    if N <= b_tile:
        b_tile = _round_up(N, b_sub)
    return b_tile, b_sub, h_sub, cout_tile


def conv_block_forward_nhwc(x_nhwc, w_oihw, running_mean, running_var, beta,
                            eps=1e-5, b_tile=None, out_dtype=jnp.bfloat16):
    """ConvBlock forward (conv no-bias -> eval-mode centered BN -> ReLU), NHWC.

    x_nhwc : (N, H, W, Cin)
    w_oihw : (Cout, Cin, K, K)   (PyTorch Conv2d weight layout)
    running_mean / running_var / beta : (Cout,)
    returns: (N, H, W, Cout) in `out_dtype` (bf16 by default).
    """
    N, H, W, Cin = x_nhwc.shape
    Cout, Cin_w, K, K2 = w_oihw.shape
    assert Cin_w == Cin and K == K2
    # PyTorch padding=K//2 only preserves (H, W) / matches SAME for odd K.
    assert K % 2 == 1, "ConvBlock kernel requires an odd kernel size"

    p = K // 2
    Hp, Wp = H + 2 * p, W + 2 * p
    HW = H * W
    Cin_p = _round_up(Cin, 128)
    Cout_p = _round_up(Cout, 128)

    bt, b_sub, h_sub, cout_tile = _choose_tiles(N, H, W, Hp, Wp, K, Cin_p, Cout_p)
    if b_tile is not None:
        bt = _round_up(max(int(b_tile), b_sub), b_sub)
        if N <= bt:
            bt = _round_up(N, b_sub)
    n_pad = _round_up(N, bt)

    kk_cin = K * K * Cin_p
    R = b_sub * h_sub * W
    hw_sub = h_sub * W
    num_h_sub = H // h_sub
    num_sub = (bt // b_sub) * num_h_sub
    co_tiles = Cout_p // cout_tile
    n_tiles = n_pad // bt

    # ---- wrapper glue (XLA): zero padding + BN folding + bf16 cast ----------
    x_pad = jnp.pad(x_nhwc, ((0, n_pad - N), (p, p), (p, p), (0, Cin_p - Cin)))
    x_pad = x_pad.astype(jnp.bfloat16)

    inv_std = lax.rsqrt(running_var.astype(jnp.float32) + eps)   # gamma == 1
    w_hwio = jnp.transpose(w_oihw, (2, 3, 1, 0)).astype(jnp.float32)
    w_scaled = w_hwio * inv_std[None, None, None, :]             # fold BN scale
    w_mat = jnp.pad(w_scaled,
                    ((0, 0), (0, 0), (0, Cin_p - Cin), (0, Cout_p - Cout)))
    w_mat = w_mat.reshape(kk_cin, Cout_p).astype(jnp.bfloat16)   # im2col layout

    shift = beta.astype(jnp.float32) - running_mean.astype(jnp.float32) * inv_std
    shift = jnp.pad(shift, (0, Cout_p - Cout)).reshape(1, Cout_p)

    # ---- kernel --------------------------------------------------------------
    def kernel(xp_ref, w_ref, shift_ref, o_ref, patch_ref):
        # xp_ref   : (bt, Hp, Wp, Cin_p)     bf16 padded input tile
        # w_ref    : (kk_cin, cout_tile)     bf16 weights (BN scale folded in)
        # shift_ref: (1, cout_tile)          f32  (beta - mean/std)
        # o_ref    : (bt, H*W, cout_tile)    out_dtype
        # patch_ref: (R, kk_cin)             bf16 im2col scratch
        shift_v = shift_ref[...]

        def sub_block(idx, carry):
            if num_h_sub > 1:
                bi = idx // num_h_sub
                hi = idx - bi * num_h_sub
                h0 = pl.multiple_of(hi * h_sub, h_sub)
                r0 = pl.multiple_of(hi * hw_sub, hw_sub)
            else:
                bi = idx
                h0 = 0
                r0 = 0
            b0 = pl.multiple_of(bi * b_sub, b_sub)

            # Explicit im2col into VMEM scratch: K leading-dim loads (kh) and
            # K lane-aligned stores each (kw); the kw sublane shift is paid
            # here once and overlaps the previous sub-block's MXU work.
            for kh in range(K):
                slab = xp_ref[pl.ds(b0, b_sub), pl.ds(h0 + kh, h_sub), :, :]
                for kw in range(K):
                    tap = kh * K + kw
                    patch_ref[:, tap * Cin_p:(tap + 1) * Cin_p] = (
                        slab[:, :, kw:kw + W, :].reshape(R, Cin_p))

            # One deep MXU dot per sub-block (depth = K*K*Cin_p).
            acc = jnp.dot(patch_ref[...], w_ref[...],
                          preferred_element_type=jnp.float32)      # (R, cout) f32
            out = jnp.maximum(acc + shift_v, 0.0).astype(o_ref.dtype)
            o_ref[pl.ds(b0, b_sub), pl.ds(r0, hw_sub), :] = (
                out.reshape(b_sub, hw_sub, cout_tile))
            return carry

        lax.fori_loop(0, num_sub, sub_block, 0)

    # VMEM: actual pipelined-block usage + headroom (not a flat large limit).
    out_bs = jnp.dtype(out_dtype).itemsize
    in_block = bt * Hp * _round_up(Wp, 16) * Cin_p * 2
    w_block = kk_cin * cout_tile * 2
    out_block = bt * _round_up(HW, 16) * cout_tile * out_bs
    shift_block = 8 * cout_tile * 4
    patch_block = _round_up(R, 16) * kk_cin * 2
    est = 2 * (in_block + w_block + out_block + shift_block) + patch_block
    vmem_limit = int(min(max(2 * est, est + (8 << 20)), 64 << 20))

    out = pl.pallas_call(
        kernel,
        out_shape=jax.ShapeDtypeStruct((n_pad, HW, Cout_p), out_dtype),
        # Cout axis outermost, batch axis innermost: weights + shift stay
        # resident across the batch sweep; inputs stream once per Cout tile.
        grid=(co_tiles, n_tiles),
        in_specs=[
            pl.BlockSpec((bt, Hp, Wp, Cin_p), lambda co, n: (n, 0, 0, 0)),
            pl.BlockSpec((kk_cin, cout_tile), lambda co, n: (0, co)),
            pl.BlockSpec((1, cout_tile), lambda co, n: (0, co)),
        ],
        out_specs=pl.BlockSpec((bt, HW, cout_tile), lambda co, n: (n, 0, co)),
        scratch_shapes=[pltpu.VMEM((R, kk_cin), jnp.bfloat16)],
        compiler_params=pltpu.CompilerParams(
            dimension_semantics=("parallel", "parallel"),
            vmem_limit_bytes=vmem_limit),
    )(x_pad, w_mat, shift)

    out = out.reshape(n_pad, H, W, Cout_p)
    return out[:N, :, :, :Cout]


def conv_block_forward(x_nchw, w_oihw, running_mean, running_var, beta,
                       eps=1e-5, b_tile=None):
    """NCHW convenience wrapper matching the PyTorch module's layout/dtype."""
    x_nhwc = jnp.transpose(x_nchw, (0, 2, 3, 1))
    out_nhwc = conv_block_forward_nhwc(x_nhwc, w_oihw, running_mean,
                                       running_var, beta, eps=eps,
                                       b_tile=b_tile, out_dtype=jnp.bfloat16)
    return jnp.transpose(out_nhwc, (0, 3, 1, 2)).astype(x_nchw.dtype)


def _reference(x_nchw, w_oihw, running_mean, running_var, beta, eps=1e-5):
    """Pure-JAX reference with the same semantics (correctness check)."""
    conv = lax.conv_general_dilated(
        x_nchw, w_oihw, window_strides=(1, 1), padding="SAME",
        dimension_numbers=("NCHW", "OIHW", "NCHW"))
    inv_std = 1.0 / jnp.sqrt(running_var + eps)
    bn = ((conv - running_mean[None, :, None, None])
          * inv_std[None, :, None, None] + beta[None, :, None, None])
    return jnp.maximum(bn, 0.0)


def _run_case(key, N, Cin, Cout, H, W, K, w_scale=0.1, name=""):
    kx, kw_, km, kv, kb = jax.random.split(key, 5)
    x = jax.random.normal(kx, (N, Cin, H, W), dtype=jnp.float32)
    w = jax.random.normal(kw_, (Cout, Cin, K, K), dtype=jnp.float32) * w_scale
    running_mean = jax.random.normal(km, (Cout,), dtype=jnp.float32) * 0.1
    running_var = jax.random.uniform(kv, (Cout,), dtype=jnp.float32,
                                     minval=0.5, maxval=1.5)
    beta = jax.random.normal(kb, (Cout,), dtype=jnp.float32) * 0.1

    out = conv_block_forward(x, w, running_mean, running_var, beta)
    out = jax.block_until_ready(out)
    ref = _reference(x, w, running_mean, running_var, beta)

    assert out.shape == ref.shape, (out.shape, ref.shape)
    max_ref = float(jnp.max(jnp.abs(ref)))
    max_err = float(jnp.max(jnp.abs(out.astype(jnp.float32) - ref)))
    # bf16 MXU operands + bf16 kernel output -> magnitude-scaled tolerance.
    tol = 1e-2 + 2e-2 * max(1.0, max_ref)
    assert max_err < tol, f"{name}: max abs err {max_err} (tol {tol})"


if __name__ == "__main__":
    key = jax.random.PRNGKey(0)
    k1, k2, k3 = jax.random.split(key, 3)
    # Small chess-board-like shapes (module targets 8x8 boards).
    _run_case(k1, N=4, Cin=4, Cout=8, H=8, W=8, K=3, name="3x3 small")
    # 1x1 conv block (policy / value head style).
    _run_case(k2, N=2, Cin=16, Cout=32, H=8, W=8, K=1, name="1x1")
    # Realistic channel count to sanity-check bf16 accumulation error.
    _run_case(k3, N=8, Cin=128, Cout=128, H=8, W=8, K=3, w_scale=0.05,
              name="3x3 c128")
    print("KERNEL_OK")
</pallas_src>

<mosaic_0001>
module attributes {stable_mosaic.version = 11 : i64} {
  func.func @kernel(%arg0: i32, %arg1: i32, %arg2: memref<4x10x10x128xbf16, #tpu.memory_space<vmem>>, %arg3: memref<1152x128xbf16, #tpu.memory_space<vmem>>, %arg4: memref<1x128xf32, #tpu.memory_space<vmem>>, %arg5: memref<4x64x128xbf16, #tpu.memory_space<vmem>>, %arg6: memref<128x1152xbf16, #tpu.memory_space<vmem>>) attributes {dimension_semantics = [#tpu.dimension_semantics<parallel>, #tpu.dimension_semantics<parallel>], iteration_bounds = array<i64: 1, 1>, scalar_prefetch = 0 : i64, scratch_operands = 1 : i64, tpu.core_type = #tpu.core_type<tc>, window_params = [{transform_indices = @transform_0, window_bounds = array<i64: 4, 10, 10, 128>}, {transform_indices = @transform_1, window_bounds = array<i64: 1152, 128>}, {transform_indices = @transform_2, window_bounds = array<i64: 1, 128>}, {transform_indices = @transform_3, window_bounds = array<i64: 4, 64, 128>}]} {
    %c0 = arith.constant 0 : index
    %c0_0 = arith.constant 0 : index
    %0 = vector.load %arg4[%c0, %c0_0] : memref<1x128xf32, #tpu.memory_space<vmem>>, vector<1x128xf32>
    %c0_i32 = arith.constant 0 : i32
    %c2_i32 = arith.constant 2 : i32
    %1 = arith.addi %c0_i32, %c2_i32 : i32
    %c1_i32 = arith.constant 1 : i32
    scf.for %arg7 = %c0_i32 to %1 step %c1_i32  : i32 {
      %c2_i32_2 = arith.constant 2 : i32
      %2 = arith.muli %arg7, %c2_i32_2 : i32
      %3 = tpu.assume_multiple %2, 2 : i32
      %4 = arith.index_cast %3 : i32 to index
      %c0_3 = arith.constant 0 : index
      %c0_4 = arith.constant 0 : index
      %c0_5 = arith.constant 0 : index
      %5 = vector.load %arg2[%4, %c0_3, %c0_4, %c0_5] : memref<4x10x10x128xbf16, #tpu.memory_space<vmem>>, vector<2x8x10x128xbf16>
      %6 = vector.extract_strided_slice %5 {offsets = [0, 0, 0, 0], sizes = [2, 8, 8, 128], strides = [1, 1, 1, 1]} : vector<2x8x10x128xbf16> to vector<2x8x8x128xbf16>
      %7 = vector.shape_cast %6 : vector<2x8x8x128xbf16> to vector<128x128xbf16>
      %c0_6 = arith.constant 0 : index
      %c0_7 = arith.constant 0 : index
      %8 = vector.load %arg6[%c0_6, %c0_7] : memref<128x1152xbf16, #tpu.memory_space<vmem>>, vector<128x128xbf16>
      tpu.vector_store %arg6[%c0_6, %c0_7], %7 {strides = array<i32>} : memref<128x1152xbf16, #tpu.memory_space<vmem>>, vector<128x128xbf16>,
      %9 = vector.extract_strided_slice %5 {offsets = [0, 0, 1, 0], sizes = [2, 8, 8, 128], strides = [1, 1, 1, 1]} : vector<2x8x10x128xbf16> to vector<2x8x8x128xbf16>
      %10 = vector.shape_cast %9 : vector<2x8x8x128xbf16> to vector<128x128xbf16>
      %c0_8 = arith.constant 0 : index
      %c128 = arith.constant 128 : index
      %11 = vector.load %arg6[%c0_8, %c128] : memref<128x1152xbf16, #tpu.memory_space<vmem>>, vector<128x128xbf16>
      tpu.vector_store %arg6[%c0_8, %c128], %10 {strides = array<i32>} : memref<128x1152xbf16, #tpu.memory_space<vmem>>, vector<128x128xbf16>,
      %12 = vector.extract_strided_slice %5 {offsets = [0, 0, 2, 0], sizes = [2, 8, 8, 128], strides = [1, 1, 1, 1]} : vector<2x8x10x128xbf16> to vector<2x8x8x128xbf16>
      %13 = vector.shape_cast %12 : vector<2x8x8x128xbf16> to vector<128x128xbf16>
      %c0_9 = arith.constant 0 : index
      %c256 = arith.constant 256 : index
      %14 = vector.load %arg6[%c0_9, %c256] : memref<128x1152xbf16, #tpu.memory_space<vmem>>, vector<128x128xbf16>
      tpu.vector_store %arg6[%c0_9, %c256], %13 {strides = array<i32>} : memref<128x1152xbf16, #tpu.memory_space<vmem>>, vector<128x128xbf16>,
      %15 = arith.index_cast %3 : i32 to index
      %c1 = arith.constant 1 : index
      %c0_10 = arith.constant 0 : index
      %c0_11 = arith.constant 0 : index
      %16 = vector.load %arg2[%15, %c1, %c0_10, %c0_11] : memref<4x10x10x128xbf16, #tpu.memory_space<vmem>>, vector<2x8x10x128xbf16>
      %17 = vector.extract_strided_slice %16 {offsets = [0, 0, 0, 0], sizes = [2, 8, 8, 128], strides = [1, 1, 1, 1]} : vector<2x8x10x128xbf16> to vector<2x8x8x128xbf16>
      %18 = vector.shape_cast %17 : vector<2x8x8x128xbf16> to vector<128x128xbf16>
      %c0_12 = arith.constant 0 : index
      %c384 = arith.constant 384 : index
      %19 = vector.load %arg6[%c0_12, %c384] : memref<128x1152xbf16, #tpu.memory_space<vmem>>, vector<128x128xbf16>
      tpu.vector_store %arg6[%c0_12, %c384], %18 {strides = array<i32>} : memref<128x1152xbf16, #tpu.memory_space<vmem>>, vector<128x128xbf16>,
      %20 = vector.extract_strided_slice %16 {offsets = [0, 0, 1, 0], sizes = [2, 8, 8, 128], strides = [1, 1, 1, 1]} : vector<2x8x10x128xbf16> to vector<2x8x8x128xbf16>
      %21 = vector.shape_cast %20 : vector<2x8x8x128xbf16> to vector<128x128xbf16>
      %c0_13 = arith.constant 0 : index
      %c512 = arith.constant 512 : index
      %22 = vector.load %arg6[%c0_13, %c512] : memref<128x1152xbf16, #tpu.memory_space<vmem>>, vector<128x128xbf16>
      tpu.vector_store %arg6[%c0_13, %c512], %21 {strides = array<i32>} : memref<128x1152xbf16, #tpu.memory_space<vmem>>, vector<128x128xbf16>,
      %23 = vector.extract_strided_slice %16 {offsets = [0, 0, 2, 0], sizes = [2, 8, 8, 128], strides = [1, 1, 1, 1]} : vector<2x8x10x128xbf16> to vector<2x8x8x128xbf16>
      %24 = vector.shape_cast %23 : vector<2x8x8x128xbf16> to vector<128x128xbf16>
      %c0_14 = arith.constant 0 : index
      %c640 = arith.constant 640 : index
      %25 = vector.load %arg6[%c0_14, %c640] : memref<128x1152xbf16, #tpu.memory_space<vmem>>, vector<128x128xbf16>
      tpu.vector_store %arg6[%c0_14, %c640], %24 {strides = array<i32>} : memref<128x1152xbf16, #tpu.memory_space<vmem>>, vector<128x128xbf16>,
      %26 = arith.index_cast %3 : i32 to index
      %c2 = arith.constant 2 : index
      %c0_15 = arith.constant 0 : index
      %c0_16 = arith.constant 0 : index
      %27 = vector.load %arg2[%26, %c2, %c0_15, %c0_16] : memref<4x10x10x128xbf16, #tpu.memory_space<vmem>>, vector<2x8x10x128xbf16>
      %28 = vector.extract_strided_slice %27 {offsets = [0, 0, 0, 0], sizes = [2, 8, 8, 128], strides = [1, 1, 1, 1]} : vector<2x8x10x128xbf16> to vector<2x8x8x128xbf16>
      %29 = vector.shape_cast %28 : vector<2x8x8x128xbf16> to vector<128x128xbf16>
      %c0_17 = arith.constant 0 : index
      %c768 = arith.constant 768 : index
      %30 = vector.load %arg6[%c0_17, %c768] : memref<128x1152xbf16, #tpu.memory_space<vmem>>, vector<128x128xbf16>
      tpu.vector_store %arg6[%c0_17, %c768], %29 {strides = array<i32>} : memref<128x1152xbf16, #tpu.memory_space<vmem>>, vector<128x128xbf16>,
      %31 = vector.extract_strided_slice %27 {offsets = [0, 0, 1, 0], sizes = [2, 8, 8, 128], strides = [1, 1, 1, 1]} : vector<2x8x10x128xbf16> to vector<2x8x8x128xbf16>
      %32 = vector.shape_cast %31 : vector<2x8x8x128xbf16> to vector<128x128xbf16>
      %c0_18 = arith.constant 0 : index
      %c896 = arith.constant 896 : index
      %33 = vector.load %arg6[%c0_18, %c896] : memref<128x1152xbf16, #tpu.memory_space<vmem>>, vector<128x128xbf16>
      tpu.vector_store %arg6[%c0_18, %c896], %32 {strides = array<i32>} : memref<128x1152xbf16, #tpu.memory_space<vmem>>, vector<128x128xbf16>,
      %34 = vector.extract_strided_slice %27 {offsets = [0, 0, 2, 0], sizes = [2, 8, 8, 128], strides = [1, 1, 1, 1]} : vector<2x8x10x128xbf16> to vector<2x8x8x128xbf16>
      %35 = vector.shape_cast %34 : vector<2x8x8x128xbf16> to vector<128x128xbf16>
      %c0_19 = arith.constant 0 : index
      %c1024 = arith.constant 1024 : index
      %36 = vector.load %arg6[%c0_19, %c1024] : memref<128x1152xbf16, #tpu.memory_space<vmem>>, vector<128x128xbf16>
      tpu.vector_store %arg6[%c0_19, %c1024], %35 {strides = array<i32>} : memref<128x1152xbf16, #tpu.memory_space<vmem>>, vector<128x128xbf16>,
      %c0_20 = arith.constant 0 : index
      %c0_21 = arith.constant 0 : index
      %37 = vector.load %arg6[%c0_20, %c0_21] : memref<128x1152xbf16, #tpu.memory_space<vmem>>, vector<128x1152xbf16>
      %c0_22 = arith.constant 0 : index
      %c0_23 = arith.constant 0 : index
      %38 = vector.load %arg3[%c0_22, %c0_23] : memref<1152x128xbf16, #tpu.memory_space<vmem>>, vector<1152x128xbf16>
      %cst = arith.constant dense<0.000000e+00> : vector<128x128xf32>
      %39 = tpu.matmul %37, %38, %cst {dimension_numbers = #tpu.dot_dimension_numbers<[1], [0], [0], [1], [0, 0, 1, 1], [], []>} : vector<128x1152xbf16>, vector<1152x128xbf16>, vector<128x128xf32> -> vector<128x128xf32>
      %40 = vector.broadcast %0 : vector<1x128xf32> to vector<128x128xf32>
      %41 = arith.addf %39, %40 : vector<128x128xf32>
      %cst_24 = arith.constant 0.000000e+00 : f32
      %42 = vector.broadcast %cst_24 : f32 to vector<128x128xf32>
      %43 = arith.maximumf %41, %42 : vector<128x128xf32>
      %44 = arith.truncf %43 : vector<128x128xf32> to vector<128x128xbf16>
      %45 = vector.shape_cast %44 : vector<128x128xbf16> to vector<2x64x128xbf16>
      %46 = arith.index_cast %3 : i32 to index
      %c0_25 = arith.constant 0 : index
      %c0_26 = arith.constant 0 : index
      %47 = vector.load %arg5[%46, %c0_25, %c0_26] : memref<4x64x128xbf16, #tpu.memory_space<vmem>>, vector<2x64x128xbf16>
      tpu.vector_store %arg5[%46, %c0_25, %c0_26], %45 {strides = array<i32>} : memref<4x64x128xbf16, #tpu.memory_space<vmem>>, vector<2x64x128xbf16>,
    }
    %c2_i32_1 = arith.constant 2 : i32
    return
  }
  func.func @transform_0(%arg0: i32, %arg1: i32) -> (i32, i32, i32, i32) {
    %c0_i32 = arith.constant 0 : i32
    %c0_i32_0 = arith.constant 0 : i32
    %c0_i32_1 = arith.constant 0 : i32
    %c0_i32_2 = arith.constant 0 : i32
    return %arg1, %c0_i32, %c0_i32_0, %c0_i32_1 : i32, i32, i32, i32
  }
  func.func @transform_1(%arg0: i32, %arg1: i32) -> (i32, i32) {
    %c0_i32 = arith.constant 0 : i32
    %c0_i32_0 = arith.constant 0 : i32
    return %c0_i32, %arg0 : i32, i32
  }
  func.func @transform_2(%arg0: i32, %arg1: i32) -> (i32, i32) {
    %c0_i32 = arith.constant 0 : i32
    %c0_i32_0 = arith.constant 0 : i32
    return %c0_i32, %arg0 : i32, i32
  }
  func.func @transform_3(%arg0: i32, %arg1: i32) -> (i32, i32, i32) {
    %c0_i32 = arith.constant 0 : i32
    %c0_i32_0 = arith.constant 0 : i32
    return %arg1, %c0_i32, %arg0 : i32, i32, i32
  }
}

</mosaic_0001>

<bundles_post_ra>
// kernel: tpu_custom_call.1
= control target key start
LH: loop header
LB: loop body
LE: loop exit
PB: predicated region body
PF: predicated region fallthrough
CT: control target
= control target key end

     0   :  { %8 = vsyncpa [#allocation4], 0  ;;  %s4748_s0 = inlined_call_operand.vmem [shape: bf16[4,10,10,128], index: 0, kind: input, shape index: {}]   ;;  %s4749_s1 = inlined_call_operand.hbm [shape: bf16[1152,128], index: 1, kind: input, shape index: {}]   ;;  %s4750_s2 = inlined_call_operand.vmem [shape: f32[1,128], index: 2, kind: input, shape index: {}]   ;;  %s4751_s3 = inlined_call_operand.hbm [shape: bf16[4,64,128], index: 3, kind: output, shape index: {}]  }
   0x1   :  { %9 = vsyncpa [#allocation5], 0  ;;  %s3891_s12 = smov [#allocation3]  }
   0x2   :  { %s17_s13 = sshll.u32 %s3891_s12, 4  ;;  %s18_s13 = int_to_ptr.vmem [resolvable:$true] %s17_s13 }
   0x3   :  { %s3847_s14 = scalar_lea.vmem %s18_s13, 9216  ;;  %p3852_p1 = scmp.lt.s32.totalorder %s18_s13, %s18_s13 }
   0x4   :  { %p3848_p0 = scmp.ne.s32.totalorder %s18_s13, %s3847_s14  ;;  %p3853_p2 = scmp.lt.s32.totalorder %s3847_s14, %s3847_s14 }
   0x6   :  { %p3854_p3 = por %p3853_p2, %p3852_p1 }
   0x8   :  { %p3855_p4 = pnand %p3854_p3, %p3848_p0 }
   0xa   :  { %3858 = shalt.err (!%p3855_p4)
}
   0xb   :  { %s3892_s15 = smov 64   ;;  %s3893_s16 = smov 4  }
   0xc   :  { %23 = dma.hbm_to_vmem [thread:$0]  %s4749_s1, 9216, %s18_s13, [#allocation4], %s3892_s15, %s3892_s15, %s3893_s16  }
   0xd   :  { %3883 = dma.done.wait [#allocation4], 9216  }
   0xe   :  { %3884 = vsyncadd [#allocation4], 4294958080  ;;  %v3924_v0 = vld [vmem:[%s4750_s2] ss:$0 sm:$0xff]  ;;  %s3926_s21 = smov 0  }
   0xf   :  { %4753 = vst [vmem:[#allocation9_spill] sm:$0xff] %v3924_v0 }
  0x10 LB: > { %v3675_v1 = vld [vmem:[#allocation3 + $0x78] sm:$0xff]   ;;  %v3679_v5 = vld [vmem:[#allocation3 + $0x70] sm:$0xff]   ;;  %v3683_v9 = vld [vmem:[#allocation3 + $0x68] sm:$0xff]   ;;  %s3277_s1 = smul.u32 160, %s3889_s21  ;;  %vm380_vm0 = vcmask 1042432   ;;  %vm381_vm1 = vcmask 1046532   ;;  %s3889_s21 = sphi %s3926_s21, %s36_s21  }
  0x11   : > { %v3676_v2 = vld [vmem:[#allocation3 + $0xf8] sm:$0xff]   ;;  %3343 = vmatprep.subr.bf16.mxu0 %v3675_v1  ;;  %v3680_v6 = vld [vmem:[#allocation3 + $0xf0] sm:$0xff]   ;;  %v3684_v10 = vld [vmem:[#allocation3 + $0xe8] sm:$0xff]   ;;  %vm89_vm2 = vsmask.f32 3328  ;;  %s3295_s24 = sshll.u32 %s3889_s21, 6 }
  0x12   : > { %v3677_v3 = vld [vmem:[#allocation3 + $0x38] sm:$0xff]   ;;  %3407 = vmatprep.subr.bf16.mxu1 %v3676_v2  ;;  %v3681_v7 = vld [vmem:[#allocation3 + $0x30] sm:$0xff]   ;;  %v3685_v11 = vld [vmem:[#allocation3 + $0x28] sm:$0xff]   ;;  %s3935_s23 = scalar_lea.vmem %s4748_s0, %s3277_s1  ;;  %vm90_vm3 = vsmask.f32 7440  ;;  %s4721_s25 = scalar_lea.vmem [#allocation6], %s3295_s24 }
  0x13   : > { %v3678_v4 = vld [vmem:[#allocation3 + $0xb8] sm:$0xff]   ;;  %3344 = vmatpush3.bf16.msra.mxu0 %v3677_v3  ;;  %v3682_v8 = vld [vmem:[#allocation3 + $0xb0] sm:$0xff]   ;;  %v3686_v12 = vld [vmem:[#allocation3 + $0xa8] sm:$0xff]   ;;  %s36_s21 = sadd.s32 1, %s3889_s21  }
  0x14   : > { %3408 = vmatpush3.bf16.msra.mxu1 %v3678_v4  ;;  %3345 = vmatprep.subr.bf16.mxu0 %v3679_v5  ;;  %v3687_v13 = vld [vmem:[#allocation3 + $0x60] sm:$0xff]   ;;  %v3691_v17 = vld [vmem:[#allocation3 + $0x58] sm:$0xff]   ;;  %v3695_v21 = vld [vmem:[#allocation3 + $0x50] sm:$0xff]   ;;  %p33_p5 = scmp.ge.s32.totalorder %s36_s21, 2  }
  0x15   : > { %3409 = vmatprep.subr.bf16.mxu1 %v3680_v6  ;;  %v3688_v14 = vld [vmem:[#allocation3 + $0xe0] sm:$0xff]   ;;  %v3692_v18 = vld [vmem:[#allocation3 + $0xd8] sm:$0xff]   ;;  %v3696_v22 = vld [vmem:[#allocation3 + $0xd0] sm:$0xff]   ;;  %s3894_s26 = smov (%p33_p5), [#allocation6]  }
  0x16   : > { %v4754_v0 = vld [vmem:[#allocation9_spill] sm:$0xff]  ;;  %v3693_v19 = vld [vmem:[#allocation3 + $0x18] sm:$0xff]   ;;  %v3697_v23 = vld [vmem:[#allocation3 + $0x10] sm:$0xff]   ;;  %s2968_s27 = sshll.u32 (%p33_p5), %s3894_s26, 4  ;;  %s2969_s27 = int_to_ptr.vmem [resolvable:$true] %s2968_s27 }
  0x17   : > { %3346 = vmatpush3.bf16.msra.mxu0 %v3681_v7  ;;  %v3689_v15 = vld [vmem:[#allocation3 + $0x20] sm:$0xff]   ;;  %v3694_v20 = vld [vmem:[#allocation3 + $0x98] sm:$0xff]   ;;  %v3698_v24 = vld [vmem:[#allocation3 + $0x90] sm:$0xff]   ;;  %s3859_s28 = scalar_lea.vmem (%p33_p5), %s2969_s27, 2048  ;;  %p3864_p7 = scmp.lt.s32.totalorder (%p33_p5), %s2969_s27, %s2969_s27 }
  0x18   : > { %3410 = vmatpush3.bf16.msra.mxu1 %v3682_v8  ;;  %3347 = vmatprep.subr.bf16.mxu0 %v3683_v9  ;;  %v3690_v16 = vld [vmem:[#allocation3 + $0xa0] sm:$0xff]   ;;  %v3699_v25 = vld [vmem:[#allocation3 + $0x48] sm:$0xff]   ;;  %vm3943_vm4 = vmor %vm380_vm0, %vm381_vm1  ;;  %p3860_p6 = scmp.ne.s32.totalorder (%p33_p5), %s2969_s27, %s3859_s28  ;;  %p3865_p8 = scmp.lt.s32.totalorder (%p33_p5), %s3859_s28, %s3859_s28 }
  0x19   : > { %3411 = vmatprep.subr.bf16.mxu1 %v3684_v10  ;;  %v3700_v26 = vld [vmem:[#allocation3 + $0xc8] sm:$0xff]   ;;  %v3703_v29 = vld [vmem:[#allocation3 + $0x40] sm:$0xff]   ;;  %v3951_v47 = vld [vmem:[%s3935_s23 + $0x10] sm:$0xf] }
  0x1a   : > { %v3701_v27 = vld [vmem:[#allocation3 + $0x8] sm:$0xff]   ;;  %v3704_v30 = vld [vmem:[#allocation3 + $0xc0] sm:$0xff]   ;;  %515 = vst [vmem:[#allocation2 + $0x30] sm:$0xf] %v3951_v47  ;;  %v3713_v56 = vld [vmem:[#allocation3 + $0x178] sm:$0xff]   ;;  %v545_v1 = vshrl.u32 %v3951_v47, 16  ;;  %p3866_p9 = por (%p33_p5), %p3865_p8, %p3864_p7 }
  0x1b   : > { %3348 = vmatpush3.bf16.msra.mxu0 %v3685_v11  ;;  %v3702_v28 = vld [vmem:[#allocation3 + $0x88] sm:$0xff]   ;;  %v3705_v31 = vld [vmem:[#allocation3] sm:$0xff]   ;;  %v3714_v61 = vld [vmem:[#allocation3 + $0x1f8] sm:$0xff]   ;;  %v548_v2 = vshll.u32 %v3951_v47, 16  ;;  %v3050_v11 = vrot.slane %v3951_v47, 9 }
  0x1c   : > { %3412 = vmatpush3.bf16.msra.mxu1 %v3686_v12  ;;  %3349 = vmatprep.subr.bf16.mxu0 %v3687_v13  ;;  %v3706_v32 = vld [vmem:[#allocation3 + $0x80] sm:$0xff]   ;;  %v43_v35 = vld [vmem:[%s3935_s23 + $0x8] sm:$0xf]  ;;  %v44_v36 = vld [vmem:[%s3935_s23 + $0xc] sm:$0x1]  ;;  %v3970_v9 = vrot.slane %v545_v1, 4  ;;  %p3867_p10 = pnand (%p33_p5), %p3866_p9, %p3860_p6 }
  0x1d   : > { %3413 = vmatprep.subr.bf16.mxu1 %v3688_v14  ;;  %v41_v33 = vld [vmem:[%s3935_s23] sm:$0xf]  ;;  %v42_v34 = vld [vmem:[%s3935_s23 + $0x4] sm:$0x1]  ;;  %74 = vst [vmem:[#allocation2 + $0x24] sm:$0xf] %v43_v35  ;;  %vm3961_vm5 = vmor %vm89_vm2, %vm90_vm3 }
  0x1e   : > { %73 = vst [vmem:[#allocation2] sm:$0xf] %v41_v33  ;;  %v93_v37 = vshrl.u32 %v41_v33, 16  ;;  %v96_v38 = vshll.u32 %v41_v33, 16  ;;  %v102_v39 = vshll.u32 %v42_v34, 16  ;;  %v107_v40 = vshrl.u32 %v43_v35, 16 }
  0x1f   : > { %3350 = vmatpush3.bf16.msra.mxu0 %v3689_v15  ;;  %v3948_v42 = vld [vmem:[%s3935_s23 + $0x8] sm:$0xf]  ;;  %v110_v43 = vshll.u32 %v43_v35, 16  ;;  %v116_v44 = vshll.u32 %v44_v36, 16  ;;  %v3000_v45 = vrot.slane %v41_v33, 9  ;;  %v385_v46 = vrot.slane %v42_v34, 5 }
  0x20   : > { %3414 = vmatpush3.bf16.msra.mxu1 %v3690_v16  ;;  %3351 = vmatprep.subr.bf16.mxu0 %v3691_v17  ;;  %514 = vst [vmem:[#allocation2 + $0xc] sm:$0xf] %v3948_v42  ;;  %v95_v48 = vrot.slane %v93_v37, 4  ;;  %v98_v49 = vrot.slane %v96_v38, 5  ;;  %v104_v50 = vrot.slane %v102_v39, 5  ;;  %v109_v51 = vrot.slane %v107_v40, 4 }
  0x21   : > { %3415 = vmatprep.subr.bf16.mxu1 %v3692_v18  ;;  %v112_v52 = vrot.slane %v110_v43, 5  ;;  %v118_v53 = vrot.slane %v116_v44, 5  ;;  %v386_v54 = vsel %vm3943_vm4, %v3000_v45, %v385_v46  ;;  %v3001_v55 = vrot.slane %v43_v35, 9  ;;  %v45_v13 = vld [vmem:[%s3935_s23 + $0x10] sm:$0xf]  ;;  %v3715_v45 = vld [vmem:[#allocation3 + $0x138] sm:$0xff]  }
  0x22   : > { %v99_v57 = vor.u32 %v98_v49, %v95_v48  ;;  %v389_v58 = vrot.slane %v44_v36, 5  ;;  %463 = vst [vmem:[#allocation2 + $0x8] sm:$0xf] %v386_v54  ;;  %v531_v59 = vshrl.u32 %v3948_v42, 16  ;;  %v534_v60 = vshll.u32 %v3948_v42, 16  ;;  %v3723_v37 = vld [vmem:[#allocation3 + $0x1f0] sm:$0xff]  }
  0x23   : > { %3352 = vmatpush3.bf16.msra.mxu0 %v3693_v19  ;;  %v113_v63 = vor.u32 %v112_v52, %v109_v51  ;;  %v3049_v3 = vrot.slane %v3948_v42, 9  ;;  %v3972_v10 = vrot.slane %v548_v2, 5  ;;  %v46_v15 = vld [vmem:[%s3935_s23 + $0x14] sm:$0x1]  ;;  %v47_v16 = vld [vmem:[%s3935_s23 + $0x18] sm:$0xf] }
  0x24   : > { %3416 = vmatpush3.bf16.msra.mxu1 %v3694_v20  ;;  %3353 = vmatprep.subr.bf16.mxu0 %v3695_v21  ;;  %v100_v4 = vrot.slane %v99_v57, 4  ;;  %v390_v5 = vsel %vm3943_vm4, %v3001_v55, %v389_v58  ;;  %v533_v6 = vrot.slane %v531_v59, 4  ;;  %v536_v7 = vrot.slane %v534_v60, 5  ;;  %v48_v17 = vld [vmem:[%s3935_s23 + $0x1c] sm:$0x1]  ;;  %v3722_v55 = vld [vmem:[#allocation3 + $0x170] sm:$0xff]  }
  0x25   : > { %3417 = vmatprep.subr.bf16.mxu1 %v3696_v22  ;;  %v114_v8 = vrot.slane %v113_v63, 4  ;;  %464 = vst [vmem:[#allocation2 + $0x2c] sm:$0xf] %v390_v5  ;;  %75 = vst [vmem:[#allocation2 + $0x48] sm:$0xf] %v45_v13  ;;  %v121_v18 = vshrl.u32 %v45_v13, 16  ;;  %v551_v48 = vor.u32 %v3972_v10, %v3970_v9 }
  0x26   : > { %v105_v12 = vsel %vm3961_vm5, %v100_v4, %v104_v50  ;;  %76 = vst [vmem:[#allocation2 + $0x6c] sm:$0xf] %v47_v16  ;;  %v124_v19 = vshll.u32 %v45_v13, 16  ;;  %v130_v20 = vshll.u32 %v46_v15, 16  ;;  %v135_v21 = vshrl.u32 %v47_v16, 16  ;;  %v3724_v58 = vld [vmem:[#allocation3 + $0x130] sm:$0xff]  }
  0x27   : > { %3354 = vmatpush3.bf16.msra.mxu0 %v3697_v23  ;;  %v119_v14 = vsel %vm3961_vm5, %v114_v8, %v118_v53  ;;  %332 = vst [vmem:[#allocation2 + $0x4] sm:$0xf] %v105_v12  ;;  %v3984_v22 = vld [vmem:[%s3935_s23 + $0x18] sm:$0xf]  ;;  %v138_v23 = vshll.u32 %v47_v16, 16  ;;  %v3003_v36 = vrot.slane %v47_v16, 9  ;;  %v537_v44 = vor.u32 %v536_v7, %v533_v6 }
  0x28   : > { %3418 = vmatpush3.bf16.msra.mxu1 %v3698_v24  ;;  %3355 = vmatprep.subr.bf16.mxu0 %v3699_v25  ;;  %333 = vst [vmem:[#allocation2 + $0x28] sm:$0xf] %v119_v14  ;;  %v144_v24 = vshll.u32 %v48_v17, 16  ;;  %v3002_v25 = vrot.slane %v45_v13, 9  ;;  %516 = vst [vmem:[#allocation2 + $0x54] sm:$0xf] %v3984_v22 }
  0x29   : > { %3419 = vmatprep.subr.bf16.mxu1 %v3700_v26  ;;  %v393_v26 = vrot.slane %v46_v15, 5  ;;  %v140_v33 = vrot.slane %v138_v23, 5  ;;  %v3712_v39 = vld [vmem:[#allocation2 + $0xc] ss:$36 sps:$4 sm:$0xff]   ;;  %v397_v43 = vrot.slane %v48_v17, 5  ;;  %v4005_v63 = vrot.slane %v551_v48, 4 }
  0x2a   : > { %v146_v34 = vrot.slane %v144_v24, 5  ;;  %2508 = vmatprep.mubr.bf16.mxu1 %v3712_v39  ;;  %v3707_v51 = vld [vmem:[#allocation2] ss:$36 sps:$4 sm:$0xff]   ;;  %v3725_v59 = vld [vmem:[#allocation3 + $0x1b0] sm:$0xff]   ;;  %v51_v1 = vld [vmem:[%s3935_s23 + $0x28] sm:$0xf] }
  0x2b   : > { %3356 = vmatpush3.bf16.msra.mxu0 %v3701_v27  ;;  %v3716_v27 = vld [vmem:[#allocation3 + $0x1b8] sm:$0xff]   ;;  %v394_v35 = vsel %vm3943_vm4, %v3002_v25, %v393_v26  ;;  %v398_v50 = vsel %vm3943_vm4, %v3003_v36, %v397_v43  ;;  %v49_v60 = vld [vmem:[%s3935_s23 + $0x20] sm:$0xf]  ;;  %v52_v2 = vld [vmem:[%s3935_s23 + $0x2c] sm:$0x1]  ;;  %v163_v7 = vshrl.u32 %v51_v1, 16 }
  0x2c   : > { %3420 = vmatpush3.bf16.msra.mxu1 %v3702_v28  ;;  %3357 = vmatprep.subr.bf16.mxu0 %v3703_v29  ;;  %v123_v28 = vrot.slane %v121_v18, 4  ;;  %v126_v29 = vrot.slane %v124_v19, 5  ;;  %v3710_v38 = vld [vmem:[#allocation2 + $0x8] ss:$36 sps:$4 sm:$0xff]   ;;  %465 = vst [vmem:[#allocation2 + $0x50] sm:$0xf] %v394_v35 }
  0x2d   : > { %3421 = vmatprep.subr.bf16.mxu1 %v3704_v30  ;;  %v132_v30 = vrot.slane %v130_v20, 5  ;;  %466 = vst [vmem:[#allocation2 + $0x74] sm:$0xf] %v398_v50  ;;  %77 = vst [vmem:[#allocation2 + $0x90] sm:$0xf] %v49_v60  ;;  %v149_v4 = vshrl.u32 %v49_v60, 16 }
  0x2e   : > { %v127_v40 = vor.u32 %v126_v29, %v123_v28  ;;  %v152_v5 = vshll.u32 %v49_v60, 16  ;;  %78 = vst [vmem:[#allocation2 + $0xb4] sm:$0xf] %v51_v1  ;;  %v166_v8 = vshll.u32 %v51_v1, 16  ;;  %v172_v9 = vshll.u32 %v52_v2, 16  ;;  %v3731_v10 = vld [vmem:[#allocation3 + $0x168] sm:$0xff]  }
  0x2f   : > { %3358 = vmatpush3.bf16.msra.mxu0 %v3705_v31  ;;  %v137_v31 = vrot.slane %v135_v21, 4  ;;  %v3709_v52 = vld [vmem:[#allocation2 + $0x4] ss:$36 sps:$4 sm:$0xff]   ;;  %v151_v12 = vrot.slane %v149_v4, 4  ;;  %v3004_v14 = vrot.slane %v49_v60, 9  ;;  %v165_v18 = vrot.slane %v163_v7, 4 }
  0x30   : > { %3422 = vmatpush3.bf16.msra.mxu1 %v3706_v32  ;;  %3471 = vmatprep.subr.bf16.mxu0 %v3713_v56  ;;  %v3988_v32 = vld [vmem:[%s3935_s23 + $0x20] sm:$0xf]  ;;  %v128_v49 = vrot.slane %v127_v40, 4  ;;  %v3999_v56 = vrot.slane %v537_v44, 4  ;;  %v154_v13 = vrot.slane %v152_v5, 5  ;;  %v168_v19 = vrot.slane %v166_v8, 5 }
  0x31   : > { %3535 = vmatprep.subr.bf16.mxu1 %v3714_v61  ;;  %517 = vst [vmem:[#allocation2 + $0x78] sm:$0xf] %v3988_v32  ;;  %v141_v46 = vor.u32 %v140_v33, %v137_v31  ;;  %2411 = vmatprep.mubr.bf16.mxu0 %v3709_v52  ;;  %v50_v61 = vld [vmem:[%s3935_s23 + $0x24] sm:$0x1]  ;;  %v4010_v16 = vld [vmem:[%s3935_s23 + $0x28] sm:$0xf] }
  0x32   : > { %v133_v54 = vsel %vm3961_vm5, %v128_v49, %v132_v30  ;;  %2412 = vmatmul.mubr.bf16.vlgmr.msra.gmra.mxu0 %v3707_v51  ;;  %v158_v6 = vshll.u32 %v50_v61, 16  ;;  %v401_v15 = vrot.slane %v50_v61, 5  ;;  %v174_v20 = vrot.slane %v172_v9, 5  ;;  %v4013_v21 = vld [vmem:[%s3935_s23 + $0x30] sm:$0xf]  ;;  %v3732_v30 = vld [vmem:[#allocation3 + $0x1e8] sm:$0xff]  }
  0x33   : > { %2509 = vmatmul.mubr.bf16.vlgmr.msra.gmra.mxu1 %v3710_v38  ;;  %v142_v53 = vrot.slane %v141_v46, 4  ;;  %334 = vst [vmem:[#allocation2 + $0x4c] sm:$0xf] %v133_v54  ;;  %3472 = vmatpush3.bf16.msra.mxu0 %v3715_v45  ;;  %518 = vst [vmem:[#allocation2 + $0x9c] sm:$0xf] %v4010_v16  ;;  %v155_v25 = vor.u32 %v154_v13, %v151_v12  ;;  %v169_v28 = vor.u32 %v168_v19, %v165_v18  ;;  %v3733_v40 = vld [vmem:[#allocation3 + $0x128] sm:$0xff]  }
  0x34   : > { %3536 = vmatpush3.bf16.msra.mxu1 %v3716_v27  ;;  %3473 = vmatprep.subr.bf16.mxu0 %v3722_v55  ;;  %v160_v17 = vrot.slane %v158_v6, 5  ;;  %v3721_v24 = vld [vmem:[#allocation2 + $0x50] ss:$36 sps:$4 sm:$0xff]   ;;  %v402_v26 = vsel %vm3943_vm4, %v3004_v14, %v401_v15  ;;  %v3005_v27 = vrot.slane %v51_v1, 9  ;;  %519 = vst [vmem:[#allocation2 + $0xc0] sm:$0xf] %v4013_v21 }
  0x35   : > { %v147_v57 = vsel %vm3961_vm5, %v142_v53, %v146_v34  ;;  %3537 = vmatprep.subr.bf16.mxu1 %v3723_v37  ;;  %v405_v29 = vrot.slane %v52_v2, 5  ;;  %467 = vst [vmem:[#allocation2 + $0x98] sm:$0xf] %v402_v26  ;;  %v156_v33 = vrot.slane %v155_v25, 4  ;;  %v170_v36 = vrot.slane %v169_v28, 4  ;;  %v3734_v45 = vld [vmem:[#allocation3 + $0x1a8] sm:$0xff]  }
  0x36   : > { %335 = vst [vmem:[#allocation2 + $0x70] sm:$0xf] %v147_v57  ;;  %v559_v43 = vshrl.u32 %v3984_v22, 16  ;;  %v53_v46 = vld [vmem:[%s3935_s23 + $0x30] sm:$0xf]  ;;  %v562_v48 = vshll.u32 %v3984_v22, 16 }
  0x37   : > { %3474 = vmatpush3.bf16.msra.mxu0 %v3724_v58  ;;  %v406_v37 = vsel %vm3943_vm4, %v3005_v27, %v405_v29  ;;  %v161_v39 = vsel %vm3961_vm5, %v156_v33, %v160_v17  ;;  %v175_v44 = vsel %vm3961_vm5, %v170_v36, %v174_v20  ;;  %v54_v49 = vld [vmem:[%s3935_s23 + $0x34] sm:$0x1]  ;;  %v55_v50 = vld [vmem:[%s3935_s23 + $0x38] sm:$0xf]  ;;  %v56_v51 = vld [vmem:[%s3935_s23 + $0x3c] sm:$0x1] }
  0x38   : > { %3538 = vmatpush3.bf16.msra.mxu1 %v3725_v59  ;;  %v3719_v23 = vld [vmem:[#allocation2 + $0x54] ss:$36 sps:$4 sm:$0xff]   ;;  %3475 = vmatprep.subr.bf16.mxu0 %v3731_v10  ;;  %468 = vst [vmem:[#allocation2 + $0xbc] sm:$0xf] %v406_v37  ;;  %336 = vst [vmem:[#allocation2 + $0x94] sm:$0xf] %v161_v39 }
  0x39   : > { %2516 = vmatprep.mubr.bf16.mxu1 %v3719_v23  ;;  %3539 = vmatprep.subr.bf16.mxu1 %v3732_v30  ;;  %337 = vst [vmem:[#allocation2 + $0xb8] sm:$0xf] %v175_v44  ;;  %79 = vst [vmem:[#allocation2 + $0xd8] sm:$0xf] %v53_v46  ;;  %v177_v52 = vshrl.u32 %v53_v46, 16  ;;  %v180_v53 = vshll.u32 %v53_v46, 16 }
  0x3a   : > { %v1359_v31 = vld [vmem:[#allocation2 + $0x48] sm:$0xff]  ;;  %80 = vst [vmem:[#allocation2 + $0xfc] sm:$0xf] %v55_v50  ;;  %v186_v54 = vshll.u32 %v54_v49, 16  ;;  %v191_v55 = vshrl.u32 %v55_v50, 16  ;;  %v194_v58 = vshll.u32 %v55_v50, 16 }
  0x3b   : > { %2517 = vmatmul.mubr.bf16.gmra.mxu1 %v3721_v24  ;;  %3476 = vmatpush3.bf16.msra.mxu0 %v3733_v40  ;;  %v4032_v57 = vld [vmem:[%s3935_s23 + $0x38] sm:$0xf]  ;;  %v200_v59 = vshll.u32 %v56_v51, 16  ;;  %v3006_v60 = vrot.slane %v53_v46, 9  ;;  %v409_v61 = vrot.slane %v54_v49, 5  ;;  %v3740_v1 = vld [vmem:[#allocation3 + $0x160] sm:$0xff]  }
  0x3c   : > { %3540 = vmatpush3.bf16.msra.mxu1 %v3734_v45  ;;  %520 = vst [vmem:[#allocation2 + $0xe4] sm:$0xf] %v4032_v57  ;;  %v179_v2 = vrot.slane %v177_v52, 4  ;;  %v182_v4 = vrot.slane %v180_v53, 5  ;;  %v188_v5 = vrot.slane %v186_v54, 5  ;;  %v193_v6 = vrot.slane %v191_v55, 4  ;;  %3477 = vmatprep.subr.bf16.mxu0 %v3740_v1 }
  0x3d   : > { %v1364_v34 = vld [vmem:[#allocation2 + $0x6c] sm:$0xff]  ;;  %v4036_v7 = vld [vmem:[%s3935_s23 + $0x40] sm:$0xf]  ;;  %v196_v8 = vrot.slane %v194_v58, 5  ;;  %v202_v9 = vrot.slane %v200_v59, 5  ;;  %v410_v10 = vsel %vm3943_vm4, %v3006_v60, %v409_v61  ;;  %v3007_v12 = vrot.slane %v55_v50, 9 }
  0x3e   : > { %v3717_v35 = vld [vmem:[#allocation2 + $0x4c] ss:$36 sps:$4 sm:$0xff]   ;;  %v3124_v38 = vcombine.low %v1359_v31, %v1364_v34  ;;  %521 = vst [vmem:[#allocation2 + $0x108] sm:$0xf] %v4036_v7  ;;  %v3741_v13 = vld [vmem:[#allocation3 + $0x1e0] sm:$0xff]   ;;  %v183_v17 = vor.u32 %v182_v4, %v179_v2  ;;  %v413_v18 = vrot.slane %v56_v51, 5 }
  0x3f   : > { %2419 = vmatprep.mubr.bf16.mxu0 %v3717_v35  ;;  %v3728_v14 = vld [vmem:[#allocation2 + $0x9c] ss:$36 sps:$4 sm:$0xff]   ;;  %469 = vst [vmem:[#allocation2 + $0xe0] sm:$0xf] %v410_v10  ;;  %v1369_v19 = vld [vmem:[#allocation2 + $0x90] sm:$0xff]  ;;  %v197_v20 = vor.u32 %v196_v8, %v193_v6  ;;  %3541 = vmatprep.subr.bf16.mxu1 %v3741_v13  ;;  %v4041_v23 = vrot.slane %v559_v43, 4 }
  0x40   : > { %2420 = vmatmul.mubr.bf16.gmra.mxu0 %v3124_v38  ;;  %v3730_v15 = vld [vmem:[#allocation2 + $0x98] ss:$36 sps:$4 sm:$0xff]   ;;  %2524 = vmatprep.mubr.bf16.mxu1 %v3728_v14  ;;  %v184_v26 = vrot.slane %v183_v17, 4  ;;  %v414_v27 = vsel %vm3943_vm4, %v3007_v12, %v413_v18  ;;  %v3742_v30 = vld [vmem:[#allocation3 + $0x120] sm:$0xff]   ;;  %v564_v34 = vrot.slane %v562_v48, 5 }
  0x41   : > { %v1374_v24 = vld [vmem:[#allocation2 + $0xb4] sm:$0xff]  ;;  %v198_v29 = vrot.slane %v197_v20, 4  ;;  %470 = vst [vmem:[#allocation2 + $0x104] sm:$0xf] %v414_v27  ;;  %v3743_v33 = vld [vmem:[#allocation3 + $0x1a0] sm:$0xff]   ;;  %3478 = vmatpush3.bf16.msra.mxu0 %v3742_v30  ;;  %v573_v30 = vshrl.u32 %v3988_v32, 16 }
  0x42   : > { %v3726_v25 = vld [vmem:[#allocation2 + $0x94] ss:$36 sps:$4 sm:$0xff]   ;;  %v3133_v28 = vcombine.low %v1369_v19, %v1374_v24  ;;  %v189_v31 = vsel %vm3961_vm5, %v184_v26, %v188_v5  ;;  %v57_v36 = vld [vmem:[%s3935_s23 + $0x50] sm:$0xf]  ;;  %3542 = vmatpush3.bf16.msra.mxu1 %v3743_v33  ;;  %v60_v39 = vld [vmem:[%s3935_s23 + $0x5c] sm:$0x1]  ;;  %v565_v10 = vor.u32 %v564_v34, %v4041_v23 }
  0x43   : > { %2525 = vmatmul.mubr.bf16.gmra.mxu1 %v3730_v15  ;;  %2427 = vmatprep.mubr.bf16.mxu0 %v3726_v25  ;;  %v203_v35 = vsel %vm3961_vm5, %v198_v29, %v202_v9  ;;  %338 = vst [vmem:[#allocation2 + $0xdc] sm:$0xf] %v189_v31  ;;  %v58_v37 = vld [vmem:[%s3935_s23 + $0x54] sm:$0x1]  ;;  %v59_v38 = vld [vmem:[%s3935_s23 + $0x58] sm:$0xf] }
  0x44   : > { %339 = vst [vmem:[#allocation2 + $0x100] sm:$0xf] %v203_v35  ;;  %81 = vst [vmem:[#allocation2 + $0x120] sm:$0xf] %v57_v36  ;;  %v205_v40 = vshrl.u32 %v57_v36, 16  ;;  %v208_v43 = vshll.u32 %v57_v36, 16 }
  0x45   : > { %82 = vst [vmem:[#allocation2 + $0x144] sm:$0xf] %v59_v38  ;;  %v214_v44 = vshll.u32 %v58_v37, 16  ;;  %v219_v45 = vshrl.u32 %v59_v38, 16  ;;  %v222_v46 = vshll.u32 %v59_v38, 16  ;;  %v228_v48 = vshll.u32 %v60_v39, 16 }
  0x46   : > { %v3008_v49 = vrot.slane %v57_v36, 9  ;;  %v417_v50 = vrot.slane %v58_v37, 5  ;;  %v3749_v51 = vld [vmem:[#allocation3 + $0x158] sm:$0xff]   ;;  %v207_v52 = vrot.slane %v205_v40, 4  ;;  %v210_v53 = vrot.slane %v208_v43, 5  ;;  %v3758_v40 = vld [vmem:[#allocation3 + $0x150] sm:$0xff]  }
  0x47   : > { %v216_v54 = vrot.slane %v214_v44, 5  ;;  %v221_v55 = vrot.slane %v219_v45, 4  ;;  %v4054_v58 = vld [vmem:[%s3935_s23 + $0x58] sm:$0xf]  ;;  %v224_v59 = vrot.slane %v222_v46, 5  ;;  %v230_v60 = vrot.slane %v228_v48, 5  ;;  %3479 = vmatprep.subr.bf16.mxu0 %v3749_v51 }
  0x48   : > { %2428 = vmatmul.mubr.bf16.gmra.mxu0 %v3133_v28  ;;  %v418_v61 = vsel %vm3943_vm4, %v3008_v49, %v417_v50  ;;  %v3009_v1 = vrot.slane %v59_v38, 9  ;;  %v4059_v2 = vld [vmem:[%s3935_s23 + $0x60] sm:$0xf]  ;;  %522 = vst [vmem:[#allocation2 + $0x12c] sm:$0xf] %v4054_v58  ;;  %v3750_v4 = vld [vmem:[#allocation3 + $0x1d8] sm:$0xff]   ;;  %v211_v8 = vor.u32 %v210_v53, %v207_v52 }
  0x49   : > { %v3737_v5 = vld [vmem:[#allocation2 + $0xe4] ss:$36 sps:$4 sm:$0xff]   ;;  %v421_v9 = vrot.slane %v60_v39, 5  ;;  %471 = vst [vmem:[#allocation2 + $0x128] sm:$0xf] %v418_v61  ;;  %v225_v12 = vor.u32 %v224_v59, %v221_v55  ;;  %3543 = vmatprep.subr.bf16.mxu1 %v3750_v4  ;;  %v3751_v24 = vld [vmem:[#allocation3 + $0x118] sm:$0xff]  }
  0x4a   : > { %v3739_v6 = vld [vmem:[#allocation2 + $0xe0] ss:$36 sps:$4 sm:$0xff]   ;;  %523 = vst [vmem:[#allocation2 + $0x150] sm:$0xf] %v4059_v2  ;;  %v1379_v13 = vld [vmem:[#allocation2 + $0xd8] sm:$0xff]  ;;  %2532 = vmatprep.mubr.bf16.mxu1 %v3737_v5  ;;  %v212_v14 = vrot.slane %v211_v8, 4  ;;  %3480 = vmatpush3.bf16.msra.mxu0 %v3751_v24 }
  0x4b   : > { %v422_v15 = vsel %vm3943_vm4, %v3009_v1, %v421_v9  ;;  %v1384_v17 = vld [vmem:[#allocation2 + $0xfc] sm:$0xff]  ;;  %2533 = vmatmul.mubr.bf16.gmra.mxu1 %v3739_v6  ;;  %v226_v19 = vrot.slane %v225_v12, 4  ;;  %v4068_v25 = vrot.slane %v565_v10, 4  ;;  %v62_v29 = vld [vmem:[%s3935_s23 + $0x64] sm:$0x1]  ;;  %3481 = vmatprep.subr.bf16.mxu0 %v3758_v40  ;;  %v3759_v5 = vld [vmem:[#allocation3 + $0x1d0] sm:$0xff]  }
  0x4c   : > { %v3735_v18 = vld [vmem:[#allocation2 + $0xdc] ss:$36 sps:$4 sm:$0xff]   ;;  %472 = vst [vmem:[#allocation2 + $0x14c] sm:$0xf] %v422_v15  ;;  %v3142_v20 = vcombine.low %v1379_v13, %v1384_v17  ;;  %v217_v23 = vsel %vm3961_vm5, %v212_v14, %v216_v54  ;;  %v63_v31 = vld [vmem:[%s3935_s23 + $0x68] sm:$0xf] }
  0x4d   : > { %2435 = vmatprep.mubr.bf16.mxu0 %v3735_v18  ;;  %v231_v26 = vsel %vm3961_vm5, %v226_v19, %v230_v60  ;;  %340 = vst [vmem:[#allocation2 + $0x124] sm:$0xf] %v217_v23  ;;  %v3752_v27 = vld [vmem:[#allocation3 + $0x198] sm:$0xff]   ;;  %v61_v28 = vld [vmem:[%s3935_s23 + $0x60] sm:$0xf]  ;;  %v242_v36 = vshll.u32 %v62_v29, 16 }
  0x4e   : > { %341 = vst [vmem:[#allocation2 + $0x148] sm:$0xf] %v231_v26  ;;  %v64_v33 = vld [vmem:[%s3935_s23 + $0x6c] sm:$0x1]  ;;  %83 = vst [vmem:[#allocation2 + $0x168] sm:$0xf] %v61_v28  ;;  %3544 = vmatpush3.bf16.msra.mxu1 %v3752_v27 }
  0x4f   : > { %v233_v34 = vshrl.u32 %v61_v28, 16  ;;  %v236_v35 = vshll.u32 %v61_v28, 16  ;;  %84 = vst [vmem:[#allocation2 + $0x18c] sm:$0xf] %v63_v31  ;;  %v247_v37 = vshrl.u32 %v63_v31, 16  ;;  %v250_v38 = vshll.u32 %v63_v31, 16  ;;  %3545 = vmatprep.subr.bf16.mxu1 %v3759_v5 }
  0x50   : > { %2436 = vmatmul.mubr.bf16.gmra.mxu0 %v3142_v20  ;;  %v256_v39 = vshll.u32 %v64_v33, 16  ;;  %v3010_v45 = vrot.slane %v61_v28, 9  ;;  %v425_v46 = vrot.slane %v62_v29, 5  ;;  %v4078_v48 = vld [vmem:[%s3935_s23 + $0x68] sm:$0xf]  ;;  %v244_v49 = vrot.slane %v242_v36, 5 }
  0x51   : > { %v235_v43 = vrot.slane %v233_v34, 4  ;;  %v238_v44 = vrot.slane %v236_v35, 5  ;;  %v249_v50 = vrot.slane %v247_v37, 4  ;;  %v252_v51 = vrot.slane %v250_v38, 5  ;;  %v4081_v53 = vld [vmem:[%s3935_s23 + $0x70] sm:$0xf] }
  0x52   : > { %v258_v52 = vrot.slane %v256_v39, 5  ;;  %524 = vst [vmem:[#allocation2 + $0x174] sm:$0xf] %v4078_v48  ;;  %v3746_v54 = vld [vmem:[#allocation2 + $0x12c] ss:$36 sps:$4 sm:$0xff]   ;;  %v426_v60 = vsel %vm3943_vm4, %v3010_v45, %v425_v46  ;;  %v3011_v61 = vrot.slane %v63_v31, 9 }
  0x53   : > { %v3748_v55 = vld [vmem:[#allocation2 + $0x128] ss:$36 sps:$4 sm:$0xff]   ;;  %v239_v59 = vor.u32 %v238_v44, %v235_v43  ;;  %525 = vst [vmem:[#allocation2 + $0x198] sm:$0xf] %v4081_v53  ;;  %v253_v1 = vor.u32 %v252_v51, %v249_v50  ;;  %v429_v4 = vrot.slane %v64_v33, 5  ;;  %2540 = vmatprep.mubr.bf16.mxu1 %v3746_v54  ;;  %v3760_v17 = vld [vmem:[#allocation3 + $0x110] sm:$0xff]  }
  0x54   : > { %473 = vst [vmem:[#allocation2 + $0x170] sm:$0xf] %v426_v60  ;;  %v1389_v6 = vld [vmem:[#allocation2 + $0x120] sm:$0xff]  ;;  %2541 = vmatmul.mubr.bf16.gmra.mxu1 %v3748_v55  ;;  %v4091_v18 = vrot.slane %v573_v30, 4  ;;  %v3761_v20 = vld [vmem:[#allocation3 + $0x190] sm:$0xff]   ;;  %v576_v24 = vshll.u32 %v3988_v32, 16  ;;  %3482 = vmatpush3.bf16.msra.mxu0 %v3760_v17 }
  0x55   : > { %v240_v8 = vrot.slane %v239_v59, 4  ;;  %v1394_v9 = vld [vmem:[#allocation2 + $0x144] sm:$0xff]  ;;  %v254_v12 = vrot.slane %v253_v1, 4  ;;  %v430_v13 = vsel %vm3943_vm4, %v3011_v61, %v429_v4  ;;  %v65_v23 = vld [vmem:[%s3935_s23 + $0x70] sm:$0xf]  ;;  %3546 = vmatpush3.bf16.msra.mxu1 %v3761_v20 }
  0x56   : > { %v3744_v10 = vld [vmem:[#allocation2 + $0x124] ss:$36 sps:$4 sm:$0xff]   ;;  %v3151_v14 = vcombine.low %v1389_v6, %v1394_v9  ;;  %474 = vst [vmem:[#allocation2 + $0x194] sm:$0xf] %v430_v13  ;;  %v66_v26 = vld [vmem:[%s3935_s23 + $0x74] sm:$0x1] }
  0x57   : > { %v245_v15 = vsel %vm3961_vm5, %v240_v8, %v244_v49  ;;  %2443 = vmatprep.mubr.bf16.mxu0 %v3744_v10  ;;  %v259_v19 = vsel %vm3961_vm5, %v254_v12, %v258_v52  ;;  %v67_v27 = vld [vmem:[%s3935_s23 + $0x78] sm:$0xf]  ;;  %v68_v28 = vld [vmem:[%s3935_s23 + $0x7c] sm:$0x1]  ;;  %85 = vst [vmem:[#allocation2 + $0x1b0] sm:$0xf] %v65_v23 }
  0x58   : > { %342 = vst [vmem:[#allocation2 + $0x16c] sm:$0xf] %v245_v15  ;;  %2444 = vmatmul.mubr.bf16.gmra.mxu0 %v3151_v14  ;;  %343 = vst [vmem:[#allocation2 + $0x190] sm:$0xf] %v259_v19  ;;  %v261_v29 = vshrl.u32 %v65_v23, 16  ;;  %v264_v30 = vshll.u32 %v65_v23, 16 }
  0x59   : > { %86 = vst [vmem:[#allocation2 + $0x1d4] sm:$0xf] %v67_v27  ;;  %v270_v31 = vshll.u32 %v66_v26, 16  ;;  %v275_v33 = vshrl.u32 %v67_v27, 16  ;;  %v4101_v34 = vld [vmem:[%s3935_s23 + $0x78] sm:$0xf] }
  0x5a   : > { %v278_v35 = vshll.u32 %v67_v27, 16  ;;  %v284_v36 = vshll.u32 %v68_v28, 16  ;;  %v3012_v37 = vrot.slane %v65_v23, 9  ;;  %v433_v38 = vrot.slane %v66_v26, 5  ;;  %526 = vst [vmem:[#allocation2 + $0x1bc] sm:$0xf] %v4101_v34 }
  0x5b   : > { %v3767_v39 = vld [vmem:[#allocation3 + $0x148] sm:$0xff]   ;;  %v263_v40 = vrot.slane %v261_v29, 4  ;;  %v266_v43 = vrot.slane %v264_v30, 5  ;;  %v272_v44 = vrot.slane %v270_v31, 5  ;;  %v277_v45 = vrot.slane %v275_v33, 4 }
  0x5c   : > { %v4105_v46 = vld [vmem:[%s3935_s23 + $0x80] sm:$0xf]  ;;  %v280_v49 = vrot.slane %v278_v35, 5  ;;  %v286_v50 = vrot.slane %v284_v36, 5  ;;  %v434_v51 = vsel %vm3943_vm4, %v3012_v37, %v433_v38  ;;  %v3013_v52 = vrot.slane %v67_v27, 9  ;;  %3483 = vmatprep.subr.bf16.mxu0 %v3767_v39  ;;  %v3768_v54 = vld [vmem:[#allocation3 + $0x1c8] sm:$0xff]  }
  0x5d   : > { %527 = vst [vmem:[#allocation2 + $0x1e0] sm:$0xf] %v4105_v46  ;;  %v3755_v55 = vld [vmem:[#allocation2 + $0x174] ss:$36 sps:$4 sm:$0xff]   ;;  %v267_v60 = vor.u32 %v266_v43, %v263_v40  ;;  %v437_v61 = vrot.slane %v68_v28, 5  ;;  %3547 = vmatprep.subr.bf16.mxu1 %v3768_v54  ;;  %v4110_v5 = vrot.slane %v576_v24, 5 }
  0x5e   : > { %v3757_v59 = vld [vmem:[#allocation2 + $0x170] ss:$36 sps:$4 sm:$0xff]   ;;  %475 = vst [vmem:[#allocation2 + $0x1b8] sm:$0xf] %v434_v51  ;;  %v281_v4 = vor.u32 %v280_v49, %v277_v45  ;;  %2548 = vmatprep.mubr.bf16.mxu1 %v3755_v55  ;;  %v3769_v14 = vld [vmem:[#allocation3 + $0x108] sm:$0xff]   ;;  %v3051_v19 = vrot.slane %v3984_v22, 9 }
  0x5f   : > { %v1399_v1 = vld [vmem:[#allocation2 + $0x168] sm:$0xff]  ;;  %v268_v9 = vrot.slane %v267_v60, 4  ;;  %v438_v10 = vsel %vm3943_vm4, %v3013_v52, %v437_v61  ;;  %2549 = vmatmul.mubr.bf16.gmra.mxu1 %v3757_v59  ;;  %v69_v23 = vld [vmem:[%s3935_s23 + $0x80] sm:$0xf]  ;;  %v70_v24 = vld [vmem:[%s3935_s23 + $0x84] sm:$0x1]  ;;  %3484 = vmatpush3.bf16.msra.mxu0 %v3769_v14 }
  0x60   : > { %v1404_v6 = vld [vmem:[#allocation2 + $0x18c] sm:$0xff]  ;;  %v282_v13 = vrot.slane %v281_v4, 4  ;;  %476 = vst [vmem:[#allocation2 + $0x1dc] sm:$0xf] %v438_v10  ;;  %v71_v26 = vld [vmem:[%s3935_s23 + $0x88] sm:$0xf]  ;;  %v579_v4 = vor.u32 %v4110_v5, %v4091_v18 }
  0x61   : > { %v3753_v8 = vld [vmem:[#allocation2 + $0x16c] ss:$36 sps:$4 sm:$0xff]   ;;  %v3160_v12 = vcombine.low %v1399_v1, %v1404_v6  ;;  %v273_v15 = vsel %vm3961_vm5, %v268_v9, %v272_v44  ;;  %87 = vst [vmem:[#allocation2 + $0x1f8] sm:$0xf] %v69_v23  ;;  %88 = vst [vmem:[#allocation2 + $0x21c] sm:$0xf] %v71_v26 }
  0x62   : > { %2451 = vmatprep.mubr.bf16.mxu0 %v3753_v8  ;;  %v3770_v17 = vld [vmem:[#allocation3 + $0x188] sm:$0xff]   ;;  %v287_v20 = vsel %vm3961_vm5, %v282_v13, %v286_v50  ;;  %344 = vst [vmem:[#allocation2 + $0x1b4] sm:$0xf] %v273_v15  ;;  %v289_v28 = vshrl.u32 %v69_v23, 16  ;;  %v292_v29 = vshll.u32 %v69_v23, 16  ;;  %v298_v30 = vshll.u32 %v70_v24, 16 }
  0x63   : > { %2452 = vmatmul.mubr.bf16.gmra.mxu0 %v3160_v12  ;;  %345 = vst [vmem:[#allocation2 + $0x1d8] sm:$0xf] %v287_v20  ;;  %3548 = vmatpush3.bf16.msra.mxu1 %v3770_v17  ;;  %v72_v27 = vld [vmem:[%s3935_s23 + $0x8c] sm:$0x1]  ;;  %v303_v31 = vshrl.u32 %v71_v26, 16  ;;  %v306_v33 = vshll.u32 %v71_v26, 16 }
  0x64   : > { %v312_v35 = vshll.u32 %v72_v27, 16  ;;  %v3014_v36 = vrot.slane %v69_v23, 9  ;;  %v441_v37 = vrot.slane %v70_v24, 5  ;;  %v3776_v38 = vld [vmem:[#allocation3 + $0x140] sm:$0xff]   ;;  %v291_v39 = vrot.slane %v289_v28, 4 }
  0x65   : > { %v294_v40 = vrot.slane %v292_v29, 5  ;;  %v300_v43 = vrot.slane %v298_v30, 5  ;;  %v305_v44 = vrot.slane %v303_v31, 4  ;;  %v4124_v45 = vld [vmem:[%s3935_s23 + $0x88] sm:$0xf]  ;;  %v308_v49 = vrot.slane %v306_v33, 5  ;;  %3485 = vmatprep.subr.bf16.mxu0 %v3776_v38 }
  0x66   : > { %v314_v50 = vrot.slane %v312_v35, 5  ;;  %v442_v51 = vsel %vm3943_vm4, %v3014_v36, %v441_v37  ;;  %v3015_v52 = vrot.slane %v71_v26, 9  ;;  %v4129_v54 = vld [vmem:[%s3935_s23 + $0x90] sm:$0xf]  ;;  %528 = vst [vmem:[#allocation2 + $0x204] sm:$0xf] %v4124_v45 }
  0x67   : > { %v3777_v55 = vld [vmem:[#allocation3 + $0x1c0] sm:$0xff]   ;;  %v3766_v60 = vld [vmem:[#allocation2 + $0x1b8] ss:$36 sps:$4 sm:$0xff]   ;;  %v295_v61 = vor.u32 %v294_v40, %v291_v39  ;;  %v445_v1 = vrot.slane %v72_v27, 5  ;;  %477 = vst [vmem:[#allocation2 + $0x200] sm:$0xf] %v442_v51  ;;  %v309_v6 = vor.u32 %v308_v49, %v305_v44 }
  0x68   : > { %v3764_v59 = vld [vmem:[#allocation2 + $0x1bc] ss:$36 sps:$4 sm:$0xff]   ;;  %529 = vst [vmem:[#allocation2 + $0x228] sm:$0xf] %v4129_v54  ;;  %3549 = vmatprep.subr.bf16.mxu1 %v3777_v55  ;;  %v4139_v5 = vrot.slane %v579_v4, 4  ;;  %v3052_v27 = vrot.slane %v3988_v32, 9 }
  0x69   : > { %v1409_v8 = vld [vmem:[#allocation2 + $0x1b0] sm:$0xff]  ;;  %2556 = vmatprep.mubr.bf16.mxu1 %v3764_v59  ;;  %v296_v9 = vrot.slane %v295_v61, 4  ;;  %v446_v10 = vsel %vm3943_vm4, %v3015_v52, %v445_v1  ;;  %v310_v14 = vrot.slane %v309_v6, 4  ;;  %v3778_v18 = vld [vmem:[#allocation3 + $0x100] sm:$0xff]   ;;  %v3018_v24 = vld [vmem:[%s3935_s23 + $0xc] sm:$0x1] }
  0x6a   : > { %v1414_v12 = vld [vmem:[#allocation2 + $0x1d4] sm:$0xff]  ;;  %2557 = vmatmul.mubr.bf16.gmra.mxu1 %v3766_v60  ;;  %478 = vst [vmem:[#allocation2 + $0x224] sm:$0xf] %v446_v10  ;;  %v3779_v23 = vld [vmem:[#allocation3 + $0x180] sm:$0xff]   ;;  %v540_v28 = vshll.u32 %v3018_v24, 16  ;;  %v820_v30 = vrot.slane %v3018_v24, 5  ;;  %3486 = vmatpush3.bf16.msra.mxu0 %v3778_v18 }
  0x6b   : > { %v3762_v13 = vld [vmem:[#allocation2 + $0x1b4] ss:$36 sps:$4 sm:$0xff]   ;;  %v3169_v15 = vcombine.low %v1409_v8, %v1414_v12  ;;  %v301_v17 = vsel %vm3961_vm5, %v296_v9, %v300_v43  ;;  %v315_v20 = vsel %vm3961_vm5, %v310_v14, %v314_v50  ;;  %v4147_v33 = vld [vmem:[%s3935_s23 + $0x10] sm:$0xf]  ;;  %3550 = vmatpush3.bf16.msra.mxu1 %v3779_v23  ;;  %v3069_v44 = vld [vmem:[%s3935_s23 + $0x1c] sm:$0x1] }
  0x6c   : > { %2459 = vmatprep.mubr.bf16.mxu0 %v3762_v13  ;;  %346 = vst [vmem:[#allocation2 + $0x1fc] sm:$0xf] %v301_v17  ;;  %v3020_v26 = vld [vmem:[%s3935_s23 + $0x14] sm:$0x1]  ;;  %347 = vst [vmem:[#allocation2 + $0x220] sm:$0xf] %v315_v20  ;;  %v821_v40 = vsel %vm3943_vm4, %v3049_v3, %v820_v30 }
  0x6d   : > { %2460 = vmatmul.mubr.bf16.gmra.mxu0 %v3169_v15  ;;  %v554_v29 = vshll.u32 %v3020_v26, 16  ;;  %v824_v31 = vrot.slane %v3020_v26, 5  ;;  %v3067_v35 = vld [vmem:[%s3935_s23 + $0x14] sm:$0x1]  ;;  %v4151_v36 = vld [vmem:[%s3935_s23 + $0x18] sm:$0xf] }
  0x6e   : > { %949 = vst [vmem:[#allocation2 + $0x18] sm:$0xf] %v4147_v33  ;;  %v966_v37 = vshrl.u32 %v4147_v33, 16  ;;  %v542_v38 = vrot.slane %v540_v28, 5  ;;  %950 = vst [vmem:[#allocation2 + $0x3c] sm:$0xf] %v4151_v36 }
  0x6f   : > { %v556_v39 = vrot.slane %v554_v29, 5  ;;  %v825_v43 = vsel %vm3943_vm4, %v3050_v11, %v824_v31  ;;  %898 = vst [vmem:[#allocation2 + $0x14] sm:$0xf] %v821_v40  ;;  %v969_v50 = vshll.u32 %v4147_v33, 16  ;;  %v975_v51 = vshll.u32 %v3067_v35, 16  ;;  %v4174_v4 = vld [vmem:[#allocation3 + $0x238] sm:$0xff]  }
  0x70   : > { %899 = vst [vmem:[#allocation2 + $0x38] sm:$0xf] %v825_v43  ;;  %v968_v49 = vrot.slane %v966_v37, 4  ;;  %v980_v52 = vshrl.u32 %v4151_v36, 16  ;;  %v3773_v42 = vld [vmem:[#allocation2 + $0x204] ss:$36 sps:$4 sm:$0xff]   ;;  %v543_v47 = vsel %vm3961_vm5, %v3999_v56, %v542_v38  ;;  %3615 = vmatprep.subr.bf16.mxu0 %v4174_v4  ;;  %3647 = vmatprep.subr.bf16.mxu1 %v4174_v4 }
  0x71   : > { %v3775_v3 = vld [vmem:[#allocation2 + $0x200] ss:$36 sps:$4 sm:$0xff]   ;;  %v557_v11 = vsel %vm3961_vm5, %v4005_v63, %v556_v39  ;;  %v983_v55 = vshll.u32 %v4151_v36, 16  ;;  %770 = vst [vmem:[#allocation2 + $0x10] sm:$0xf] %v543_v47  ;;  %v971_v59 = vrot.slane %v969_v50, 5  ;;  %2564 = vmatprep.mubr.bf16.mxu1 %v3773_v42 }
  0x72   : > { %771 = vst [vmem:[#allocation2 + $0x34] sm:$0xf] %v557_v11  ;;  %v977_v60 = vrot.slane %v975_v51, 5  ;;  %v982_v61 = vrot.slane %v980_v52, 4  ;;  %v989_v1 = vshll.u32 %v3069_v44, 16  ;;  %2565 = vmatmul.mubr.bf16.gmra.mxu1 %v3775_v3 }
  0x73   : > { %v1419_v6 = vld [vmem:[#allocation2 + $0x1f8] sm:$0xff]  ;;  %v985_v8 = vrot.slane %v983_v55, 5  ;;  %v3024_v56 = vld [vmem:[%s3935_s23 + $0x24] sm:$0x1]  ;;  %v972_v63 = vor.u32 %v971_v59, %v968_v49  ;;  %v4181_v24 = vld [vmem:[%s3935_s23 + $0x20] sm:$0xf] }
  0x74   : > { %v3022_v9 = vld [vmem:[%s3935_s23 + $0x1c] sm:$0x1]  ;;  %v991_v13 = vrot.slane %v989_v1, 5  ;;  %v582_v15 = vshll.u32 %v3024_v56, 16  ;;  %v832_v23 = vrot.slane %v3024_v56, 5  ;;  %v994_v35 = vshrl.u32 %v4181_v24, 16 }
  0x75   : > { %v1424_v10 = vld [vmem:[#allocation2 + $0x21c] sm:$0xff]  ;;  %v568_v14 = vshll.u32 %v3022_v9, 16  ;;  %v986_v18 = vor.u32 %v985_v8, %v982_v61  ;;  %v828_v20 = vrot.slane %v3022_v9, 5  ;;  %v4184_v26 = vld [vmem:[%s3935_s23 + $0x24] sm:$0x1]  ;;  %v973_v28 = vrot.slane %v972_v63, 4 }
  0x76   : > { %v3771_v12 = vld [vmem:[#allocation2 + $0x1fc] ss:$36 sps:$4 sm:$0xff]   ;;  %v3178_v17 = vcombine.low %v1419_v6, %v1424_v10  ;;  %v584_v30 = vrot.slane %v582_v15, 5  ;;  %v4187_v31 = vld [vmem:[%s3935_s23 + $0x28] sm:$0xf]  ;;  %v833_v39 = vsel %vm3943_vm4, %v3052_v27, %v832_v23  ;;  %v997_v43 = vshll.u32 %v4181_v24, 16 }
  0x77   : > { %2467 = vmatprep.mubr.bf16.mxu0 %v3771_v12  ;;  %v570_v29 = vrot.slane %v568_v14, 5  ;;  %951 = vst [vmem:[#allocation2 + $0x60] sm:$0xf] %v4181_v24  ;;  %v987_v37 = vrot.slane %v986_v18, 4  ;;  %v829_v38 = vsel %vm3943_vm4, %v3051_v19, %v828_v20  ;;  %v4200_v40 = vld [vmem:[%s3935_s23 + $0x2c] sm:$0x1]  ;;  %v978_v44 = vsel %vm3961_vm5, %v973_v28, %v977_v60 }
  0x78   : > { %2468 = vmatmul.mubr.bf16.gmra.mxu0 %v3178_v17  ;;  %952 = vst [vmem:[#allocation2 + $0x84] sm:$0xf] %v4187_v31  ;;  %v585_v32 = vsel %vm3961_vm5, %v4139_v5, %v584_v30  ;;  %900 = vst [vmem:[#allocation2 + $0x5c] sm:$0xf] %v829_v38  ;;  %v996_v19 = vrot.slane %v994_v35, 4  ;;  %v999_v51 = vrot.slane %v997_v43, 5 }
  0x79   : > { %v571_v22 = vsel %vm3961_vm5, %v4068_v25, %v570_v29  ;;  %901 = vst [vmem:[#allocation2 + $0x80] sm:$0xf] %v833_v39  ;;  %v4213_v27 = vld [vmem:[%s3935_s23 + $0x2c] sm:$0x1]  ;;  %v3780_v49 = vld [vmem:[#allocation2 + $0x10] ss:$36 sps:$4 sm:$0xff]   ;;  %v992_v50 = vsel %vm3961_vm5, %v987_v37, %v991_v13 }
  0x7a   : > { %1205 = vst [vmem:[#allocation2 + $0x1c] sm:$0xf] %v978_v44  ;;  %772 = vst [vmem:[#allocation2 + $0x58] sm:$0xf] %v571_v22  ;;  %v1003_v25 = vshll.u32 %v4184_v26, 16  ;;  %v1008_v5 = vshrl.u32 %v4187_v31, 16  ;;  %v1000_v11 = vor.u32 %v999_v51, %v996_v19 }
  0x7b   : > { %773 = vst [vmem:[#allocation2 + $0x7c] sm:$0xf] %v585_v32  ;;  %v3782_v52 = vld [vmem:[#allocation2 + $0x14] ss:$36 sps:$4 sm:$0xff]   ;;  %1206 = vst [vmem:[#allocation2 + $0x40] sm:$0xf] %v992_v50 }
  0x7c   : > { %v1011_v42 = vshll.u32 %v4187_v31, 16  ;;  %v1017_v3 = vshll.u32 %v4200_v40, 16  ;;  %v3100_v47 = vrot.slane %v4181_v24, 9  ;;  %v1005_v55 = vrot.slane %v1003_v25, 5  ;;  %v4225_v61 = vld [vmem:[%s3935_s23 + $0x34] sm:$0x1]  ;;  %2605 = vmatprep.mubr.bf16.mxu0 %v3782_v52 }
  0x7d   : > { %v1263_v59 = vrot.slane %v4184_v26, 5  ;;  %v3101_v60 = vrot.slane %v4187_v31, 9  ;;  %v1010_v1 = vrot.slane %v1008_v5, 4  ;;  %v1267_v9 = vrot.slane %v4200_v40, 5  ;;  %v4229_v56 = vld [vmem:[%s3935_s23 + $0x30] sm:$0xf] }
  0x7e   : > { %v1013_v6 = vrot.slane %v1011_v42, 5  ;;  %v1019_v8 = vrot.slane %v1017_v3, 5  ;;  %v1001_v10 = vrot.slane %v1000_v11, 4  ;;  %v4231_v12 = vld [vmem:[#allocation3 + $0x230] sm:$0xff]   ;;  %v587_v63 = vshrl.u32 %v4010_v16, 16  ;;  %v4250_v40 = vld [vmem:[#allocation3 + $0x228] sm:$0xff]  }
  0x7f   : > { %v590_v13 = vshll.u32 %v4010_v16, 16  ;;  %v596_v14 = vshll.u32 %v4213_v27, 16  ;;  %953 = vst [vmem:[#allocation2 + $0xa8] sm:$0xf] %v4229_v56  ;;  %v601_v17 = vshrl.u32 %v4013_v21, 16  ;;  %v604_v18 = vshll.u32 %v4013_v21, 16 }
  0x80   : > { %v1014_v15 = vor.u32 %v1013_v6, %v1010_v1  ;;  %v610_v20 = vshll.u32 %v4225_v61, 16  ;;  %v4241_v23 = vld [vmem:[%s3935_s23 + $0x38] sm:$0xf]  ;;  %2606 = vmatmul.mubr.bf16.vlgmr.msra.gmra.mxu0 %v3780_v49  ;;  %v1006_v24 = vsel %vm3961_vm5, %v1001_v10, %v1005_v55  ;;  %v589_v26 = vrot.slane %v587_v63, 4  ;;  %v4246_v30 = vld [vmem:[%s3935_s23 + $0x34] sm:$0x1] }
  0x81   : > { %v592_v28 = vrot.slane %v590_v13, 5  ;;  %v598_v29 = vrot.slane %v596_v14, 5  ;;  %954 = vst [vmem:[#allocation2 + $0xcc] sm:$0xf] %v4241_v23  ;;  %3616 = vmatpush3.bf16.msra.mxu0 %v4174_v4  ;;  %v1361_v31 = vld [vmem:[#allocation2 + $0x58] sm:$0xff]  ;;  %v603_v38 = vrot.slane %v601_v17, 4  ;;  %v1264_v43 = vsel %vm3943_vm4, %v3100_v47, %v1263_v59 }
  0x82   : > { %v1366_v35 = vld [vmem:[#allocation2 + $0x7c] sm:$0xff]  ;;  %v1015_v37 = vrot.slane %v1014_v15, 4  ;;  %1207 = vst [vmem:[#allocation2 + $0x64] sm:$0xf] %v1006_v24  ;;  %v606_v39 = vrot.slane %v604_v18, 5  ;;  %3617 = vmatprep.subr.bf16.mxu0 %v4231_v12  ;;  %v612_v49 = vrot.slane %v610_v20, 5  ;;  %v1268_v50 = vsel %vm3943_vm4, %v3101_v60, %v1267_v9 }
  0x83   : > { %v3783_v44 = vld [vmem:[#allocation2 + $0x18] ss:$36 sps:$4 sm:$0xff]   ;;  %v3128_v32 = vcombine.low %v1361_v31, %v1366_v35  ;;  %v593_v19 = vor.u32 %v592_v28, %v589_v26  ;;  %1335 = vst [vmem:[#allocation2 + $0x68] sm:$0xf] %v1264_v43  ;;  %v3053_v5 = vrot.slane %v4010_v16, 9  ;;  %v836_v42 = vrot.slane %v4213_v27, 5 }
  0x84   : > { %v3785_v22 = vld [vmem:[#allocation2 + $0x1c] ss:$36 sps:$4 sm:$0xff]   ;;  %v1020_v25 = vsel %vm3961_vm5, %v1015_v37, %v1019_v8  ;;  %v607_v52 = vor.u32 %v606_v39, %v603_v38  ;;  %1336 = vst [vmem:[#allocation2 + $0x8c] sm:$0xf] %v1268_v50  ;;  %v3054_v47 = vrot.slane %v4013_v21, 9  ;;  %v840_v11 = vrot.slane %v4225_v61, 5 }
  0x85   : > { %v3787_v51 = vld [vmem:[#allocation2 + $0x5c] ss:$36 sps:$4 sm:$0xff]   ;;  %2702 = vmatprep.mubr.bf16.mxu1 %v3785_v22  ;;  %1208 = vst [vmem:[#allocation2 + $0x88] sm:$0xf] %v1020_v25  ;;  %v594_v3 = vrot.slane %v593_v19, 4  ;;  %v1022_v55 = vshrl.u32 %v4229_v56, 16  ;;  %v837_v16 = vsel %vm3943_vm4, %v3053_v5, %v836_v42  ;;  %3618 = vmatpush3.bf16.msra.mxu0 %v4231_v12 }
  0x86   : > { %2703 = vmatmul.mubr.bf16.vlgmr.msra.gmra.mxu1 %v3783_v44  ;;  %2613 = vmatprep.mubr.bf16.mxu0 %v3787_v51  ;;  %v608_v59 = vrot.slane %v607_v52, 4  ;;  %v4267_v60 = vld [vmem:[%s3935_s23 + $0x3c] sm:$0x1]  ;;  %v1025_v27 = vshll.u32 %v4229_v56, 16  ;;  %v1031_v1 = vshll.u32 %v4246_v30, 16  ;;  %v841_v61 = vsel %vm3943_vm4, %v3054_v47, %v840_v11  ;;  %v4290_v15 = vld [vmem:[#allocation3 + $0x220] sm:$0xff]  }
  0x87   : > { %3655 = vmatpush3.bf16.msra.mxu1 %v4174_v4  ;;  %v599_v21 = vsel %vm3961_vm5, %v594_v3, %v598_v29  ;;  %902 = vst [vmem:[#allocation2 + $0xa4] sm:$0xf] %v837_v16  ;;  %v1024_v6 = vrot.slane %v1022_v55, 4  ;;  %v1036_v8 = vshrl.u32 %v4241_v23, 16  ;;  %v4279_v9 = vld [vmem:[%s3935_s23 + $0x3c] sm:$0x1]  ;;  %3619 = vmatprep.subr.bf16.mxu0 %v4250_v40 }
  0x88   : > { %v4282_v10 = vld [vmem:[%s3935_s23 + $0x40] sm:$0xf]  ;;  %3648 = vmatprep.subr.bf16.mxu1 %v4231_v12  ;;  %v613_v4 = vsel %vm3961_vm5, %v608_v59, %v612_v49  ;;  %774 = vst [vmem:[#allocation2 + $0xa0] sm:$0xf] %v599_v21  ;;  %903 = vst [vmem:[#allocation2 + $0xc8] sm:$0xf] %v841_v61  ;;  %2614 = vmatmul.mubr.bf16.gmra.mxu0 %v3128_v32 }
  0x89   : > { %v1027_v63 = vrot.slane %v1025_v27, 5  ;;  %v1033_v13 = vrot.slane %v1031_v1, 5  ;;  %v1039_v14 = vshll.u32 %v4241_v23, 16  ;;  %955 = vst [vmem:[#allocation2 + $0xf0] sm:$0xf] %v4282_v10  ;;  %v1038_v17 = vrot.slane %v1036_v8, 4  ;;  %3620 = vmatpush3.bf16.msra.mxu0 %v4250_v40 }
  0x8a   : > { %775 = vst [vmem:[#allocation2 + $0xc4] sm:$0xf] %v613_v4  ;;  %v1045_v18 = vshll.u32 %v4267_v60, 16  ;;  %v615_v20 = vshrl.u32 %v4032_v57, 16  ;;  %v618_v24 = vshll.u32 %v4032_v57, 16  ;;  %v624_v29 = vshll.u32 %v4279_v9, 16  ;;  %3621 = vmatprep.subr.bf16.mxu0 %v4290_v15 }
  0x8b   : > { %v1028_v26 = vor.u32 %v1027_v63, %v1024_v6  ;;  %v1041_v28 = vrot.slane %v1039_v14, 5  ;;  %v629_v31 = vshrl.u32 %v4036_v7, 16  ;;  %v4298_v35 = vld [vmem:[%s3935_s23 + $0x48] sm:$0xf]  ;;  %v4300_v37 = vld [vmem:[#allocation3 + $0x218] sm:$0xff]   ;;  %3656 = vmatpush3.bf16.msra.mxu1 %v4231_v12  ;;  %v632_v22 = vshll.u32 %v4036_v7, 16 }
  0x8c   : > { %v1047_v38 = vrot.slane %v1045_v18, 5  ;;  %v3032_v39 = vld [vmem:[%s3935_s23 + $0x44] sm:$0x1]  ;;  %v617_v43 = vrot.slane %v615_v20, 4  ;;  %v620_v44 = vrot.slane %v618_v24, 5  ;;  %3649 = vmatprep.subr.bf16.mxu1 %v4250_v40  ;;  %v626_v51 = vrot.slane %v624_v29, 5 }
  0x8d   : > { %956 = vst [vmem:[#allocation2 + $0x114] sm:$0xf] %v4298_v35  ;;  %v3789_v32 = vld [vmem:[#allocation2 + $0x64] ss:$36 sps:$4 sm:$0xff]   ;;  %v1029_v49 = vrot.slane %v1028_v26, 4  ;;  %v1042_v50 = vor.u32 %v1041_v28, %v1038_v17  ;;  %v631_v25 = vrot.slane %v629_v31, 4  ;;  %3622 = vmatpush3.bf16.msra.mxu0 %v4290_v15 }
  0x8e   : > { %v3791_v19 = vld [vmem:[#allocation2 + $0x60] ss:$36 sps:$4 sm:$0xff]   ;;  %v621_v12 = vor.u32 %v620_v44, %v617_v43  ;;  %v634_v52 = vrot.slane %v632_v22, 5  ;;  %2710 = vmatprep.mubr.bf16.mxu1 %v3789_v32  ;;  %v638_v47 = vshll.u32 %v3032_v39, 16  ;;  %v3055_v11 = vrot.slane %v4032_v57, 9  ;;  %3623 = vmatprep.subr.bf16.mxu0 %v4300_v37  ;;  %v4352_v44 = vld [vmem:[#allocation3 + $0x208] sm:$0xff]  }
  0x8f   : > { %v4310_v5 = vld [vmem:[%s3935_s23 + $0x44] sm:$0x1]  ;;  %v1034_v42 = vsel %vm3961_vm5, %v1029_v49, %v1033_v13  ;;  %v1043_v3 = vrot.slane %v1042_v50, 4  ;;  %2711 = vmatmul.mubr.bf16.gmra.mxu1 %v3791_v19  ;;  %v844_v27 = vrot.slane %v4279_v9, 5  ;;  %v3056_v1 = vrot.slane %v4036_v7, 9 }
  0x90   : > { %v1371_v55 = vld [vmem:[#allocation2 + $0xa0] sm:$0xff]  ;;  %1209 = vst [vmem:[#allocation2 + $0xac] sm:$0xf] %v1034_v42  ;;  %v622_v59 = vrot.slane %v621_v12, 4  ;;  %v635_v16 = vor.u32 %v634_v52, %v631_v25  ;;  %v4318_v21 = vld [vmem:[%s3935_s23 + $0x4c] sm:$0x1]  ;;  %3657 = vmatpush3.bf16.msra.mxu1 %v4250_v40 }
  0x91   : > { %v1376_v61 = vld [vmem:[#allocation2 + $0xc4] sm:$0xff]  ;;  %v1048_v8 = vsel %vm3961_vm5, %v1043_v3, %v1047_v38  ;;  %v640_v57 = vrot.slane %v638_v47, 5  ;;  %v848_v4 = vrot.slane %v3032_v39, 5  ;;  %v1050_v63 = vshrl.u32 %v4282_v10, 16  ;;  %3650 = vmatprep.subr.bf16.mxu1 %v4290_v15  ;;  %v4332_v17 = vld [vmem:[%s3935_s23 + $0x60] sm:$0xf]  ;;  %3624 = vmatpush3.bf16.msra.mxu0 %v4300_v37 }
  0x92   : > { %v3793_v6 = vld [vmem:[#allocation2 + $0xa4] ss:$36 sps:$4 sm:$0xff]   ;;  %1210 = vst [vmem:[#allocation2 + $0xd0] sm:$0xf] %v1048_v8  ;;  %v3137_v7 = vcombine.low %v1371_v55, %v1376_v61  ;;  %v627_v9 = vsel %vm3961_vm5, %v622_v59, %v626_v51  ;;  %v636_v13 = vrot.slane %v635_v16, 4  ;;  %v845_v14 = vsel %vm3943_vm4, %v3055_v11, %v844_v27  ;;  %v4334_v40 = vld [vmem:[#allocation3 + $0x210] sm:$0xff]  }
  0x93   : > { %2621 = vmatprep.mubr.bf16.mxu0 %v3793_v6  ;;  %776 = vst [vmem:[#allocation2 + $0xe8] sm:$0xf] %v627_v9  ;;  %v849_v18 = vsel %vm3943_vm4, %v3056_v1, %v848_v4  ;;  %904 = vst [vmem:[#allocation2 + $0xec] sm:$0xf] %v845_v14  ;;  %v1052_v20 = vrot.slane %v1050_v63, 4  ;;  %v1053_v24 = vshll.u32 %v4282_v10, 16  ;;  %3625 = vmatprep.subr.bf16.mxu0 %v4334_v40 }
  0x94   : > { %v1059_v26 = vshll.u32 %v4310_v5, 16  ;;  %v4341_v28 = vld [vmem:[%s3935_s23 + $0x5c] sm:$0x1]  ;;  %957 = vst [vmem:[#allocation2 + $0x138] sm:$0xf] %v4332_v17  ;;  %2622 = vmatmul.mubr.bf16.gmra.mxu0 %v3137_v7  ;;  %v641_v29 = vsel %vm3961_vm5, %v636_v13, %v640_v57  ;;  %v1064_v31 = vshrl.u32 %v4298_v35, 16  ;;  %3658 = vmatpush3.bf16.msra.mxu1 %v4290_v15 }
  0x95   : > { %905 = vst [vmem:[#allocation2 + $0x110] sm:$0xf] %v849_v18  ;;  %v1067_v38 = vshll.u32 %v4298_v35, 16  ;;  %v1073_v39 = vshll.u32 %v4318_v21, 16  ;;  %v4350_v43 = vld [vmem:[%s3935_s23 + $0x68] sm:$0xf]  ;;  %3651 = vmatprep.subr.bf16.mxu1 %v4300_v37  ;;  %3626 = vmatpush3.bf16.msra.mxu0 %v4334_v40 }
  0x96   : > { %777 = vst [vmem:[#allocation2 + $0x10c] sm:$0xf] %v641_v29  ;;  %v1055_v22 = vrot.slane %v1053_v24, 5  ;;  %v1061_v32 = vrot.slane %v1059_v26, 5  ;;  %v3036_v19 = vld [vmem:[%s3935_s23 + $0x64] sm:$0x1]  ;;  %3627 = vmatprep.subr.bf16.mxu0 %v4352_v44 }
  0x97   : > { %v643_v49 = vshrl.u32 %v4054_v58, 16  ;;  %v646_v50 = vshll.u32 %v4054_v58, 16  ;;  %958 = vst [vmem:[#allocation2 + $0x15c] sm:$0xf] %v4350_v43  ;;  %v1066_v12 = vrot.slane %v1064_v31, 4  ;;  %v1069_v51 = vrot.slane %v1067_v38, 5 }
  0x98   : > { %v1075_v25 = vrot.slane %v1073_v39, 5  ;;  %v652_v52 = vshll.u32 %v4341_v28, 16  ;;  %v1056_v15 = vor.u32 %v1055_v22, %v1052_v20  ;;  %v657_v47 = vshrl.u32 %v4059_v2, 16  ;;  %v3797_v1 = vld [vmem:[#allocation2 + $0xa8] ss:$36 sps:$4 sm:$0xff]   ;;  %3659 = vmatpush3.bf16.msra.mxu1 %v4300_v37  ;;  %v4379_v24 = vld [vmem:[#allocation3 + $0x200] sm:$0xff]  }
  0x99   : > { %v645_v42 = vrot.slane %v643_v49, 4  ;;  %v648_v3 = vrot.slane %v646_v50, 5  ;;  %v1070_v11 = vor.u32 %v1069_v51, %v1066_v12  ;;  %v660_v59 = vshll.u32 %v4059_v2, 16  ;;  %v3795_v27 = vld [vmem:[#allocation2 + $0xac] ss:$36 sps:$4 sm:$0xff]   ;;  %3652 = vmatprep.subr.bf16.mxu1 %v4334_v40  ;;  %3628 = vmatpush3.bf16.msra.mxu0 %v4352_v44 }
  0x9a   : > { %v654_v55 = vrot.slane %v652_v52, 5  ;;  %v666_v16 = vshll.u32 %v3036_v19, 16  ;;  %v1057_v61 = vrot.slane %v1056_v15, 4  ;;  %v4366_v8 = vld [vmem:[%s3935_s23 + $0x64] sm:$0x1]  ;;  %v1381_v57 = vld [vmem:[#allocation2 + $0xe8] sm:$0xff]  ;;  %2718 = vmatprep.mubr.bf16.mxu1 %v3795_v27  ;;  %3629 = vmatprep.subr.bf16.mxu0 %v4379_v24 }
  0x9b   : > { %v649_v6 = vor.u32 %v648_v3, %v645_v42  ;;  %v1071_v4 = vrot.slane %v1070_v11, 4  ;;  %v659_v63 = vrot.slane %v657_v47, 4  ;;  %v662_v7 = vrot.slane %v660_v59, 5  ;;  %v4377_v20 = vld [vmem:[%s3935_s23 + $0x6c] sm:$0x1]  ;;  %2719 = vmatmul.mubr.bf16.gmra.mxu1 %v3797_v1 }
  0x9c   : > { %v668_v9 = vrot.slane %v666_v16, 5  ;;  %v1062_v13 = vsel %vm3961_vm5, %v1057_v61, %v1061_v32  ;;  %v3057_v18 = vrot.slane %v4054_v58, 9  ;;  %v852_v37 = vrot.slane %v4341_v28, 5  ;;  %v3799_v29 = vld [vmem:[#allocation2 + $0xec] ss:$36 sps:$4 sm:$0xff]   ;;  %3660 = vmatpush3.bf16.msra.mxu1 %v4334_v40 }
  0x9d   : > { %v650_v14 = vrot.slane %v649_v6, 4  ;;  %v1386_v26 = vld [vmem:[#allocation2 + $0x10c] sm:$0xff]  ;;  %v1076_v31 = vsel %vm3961_vm5, %v1071_v4, %v1075_v25  ;;  %1211 = vst [vmem:[#allocation2 + $0xf4] sm:$0xf] %v1062_v13  ;;  %v663_v38 = vor.u32 %v662_v7, %v659_v63  ;;  %v3058_v39 = vrot.slane %v4059_v2, 9  ;;  %2629 = vmatprep.mubr.bf16.mxu0 %v3799_v29  ;;  %3653 = vmatprep.subr.bf16.mxu1 %v4352_v44 }
  0x9e   : > { %v856_v22 = vrot.slane %v3036_v19, 5  ;;  %1212 = vst [vmem:[#allocation2 + $0x118] sm:$0xf] %v1076_v31  ;;  %v3146_v58 = vcombine.low %v1381_v57, %v1386_v26  ;;  %v853_v32 = vsel %vm3943_vm4, %v3057_v18, %v852_v37  ;;  %v1078_v49 = vshrl.u32 %v4332_v17, 16  ;;  %v4390_v50 = vld [vmem:[%s3935_s23 + $0x6c] sm:$0x1]  ;;  %3630 = vmatpush3.bf16.msra.mxu0 %v4379_v24 }
  0x9f   : > { %v655_v28 = vsel %vm3961_vm5, %v650_v14, %v654_v55  ;;  %v4393_v12 = vld [vmem:[%s3935_s23 + $0x70] sm:$0xf]  ;;  %v664_v2 = vrot.slane %v663_v38, 4  ;;  %906 = vst [vmem:[#allocation2 + $0x134] sm:$0xf] %v853_v32  ;;  %v1081_v51 = vshll.u32 %v4332_v17, 16 }
  0xa0   : > { %778 = vst [vmem:[#allocation2 + $0x130] sm:$0xf] %v655_v28  ;;  %v857_v19 = vsel %vm3943_vm4, %v3058_v39, %v856_v22  ;;  %v1087_v25 = vshll.u32 %v4366_v8, 16  ;;  %v4402_v52 = vld [vmem:[%s3935_s23 + $0x78] sm:$0xf]  ;;  %2630 = vmatmul.mubr.bf16.gmra.mxu0 %v3146_v58  ;;  %v1080_v40 = vrot.slane %v1078_v49, 4  ;;  %3661 = vmatpush3.bf16.msra.mxu1 %v4352_v44 }
  0xa1   : > { %959 = vst [vmem:[#allocation2 + $0x180] sm:$0xf] %v4393_v12  ;;  %907 = vst [vmem:[#allocation2 + $0x158] sm:$0xf] %v857_v19  ;;  %v1092_v15 = vshrl.u32 %v4350_v43, 16  ;;  %v1095_v42 = vshll.u32 %v4350_v43, 16  ;;  %v669_v11 = vsel %vm3961_vm5, %v664_v2, %v668_v9  ;;  %3654 = vmatprep.subr.bf16.mxu1 %v4379_v24 }
  0xa2   : > { %v1101_v3 = vshll.u32 %v4377_v20, 16  ;;  %v4410_v47 = vld [vmem:[%s3935_s23 + $0x74] sm:$0x1]  ;;  %960 = vst [vmem:[#allocation2 + $0x1a4] sm:$0xf] %v4402_v52  ;;  %v1083_v55 = vrot.slane %v1081_v51, 5 }
  0xa3   : > { %v1089_v59 = vrot.slane %v1087_v25, 5  ;;  %v671_v16 = vshrl.u32 %v4078_v48, 16  ;;  %779 = vst [vmem:[#allocation2 + $0x154] sm:$0xf] %v669_v11  ;;  %v1094_v27 = vrot.slane %v1092_v15, 4  ;;  %v1097_v1 = vrot.slane %v1095_v42, 5 }
  0xa4   : > { %v1103_v61 = vrot.slane %v1101_v3, 5  ;;  %v674_v6 = vshll.u32 %v4078_v48, 16  ;;  %v1084_v57 = vor.u32 %v1083_v55, %v1080_v40  ;;  %v680_v63 = vshll.u32 %v4390_v50, 16  ;;  %v3803_v44 = vld [vmem:[#allocation2 + $0xf0] ss:$36 sps:$4 sm:$0xff]   ;;  %3662 = vmatpush3.bf16.msra.mxu1 %v4379_v24 }
  0xa5   : > { %v673_v4 = vrot.slane %v671_v16, 4  ;;  %v685_v7 = vshrl.u32 %v4081_v53, 16  ;;  %v1098_v9 = vor.u32 %v1097_v1, %v1094_v27  ;;  %v688_v14 = vshll.u32 %v4081_v53, 16  ;;  %v3801_v37 = vld [vmem:[#allocation2 + $0xf4] ss:$36 sps:$4 sm:$0xff]  }
  0xa6   : > { %v676_v13 = vrot.slane %v674_v6, 5  ;;  %v694_v18 = vshll.u32 %v4410_v47, 16  ;;  %v1085_v26 = vrot.slane %v1084_v57, 4  ;;  %v4426_v29 = vld [vmem:[%s3935_s23 + $0x74] sm:$0x1]  ;;  %v682_v39 = vrot.slane %v680_v63, 5  ;;  %2726 = vmatprep.mubr.bf16.mxu1 %v3801_v37 }
  0xa7   : > { %v1099_v31 = vrot.slane %v1098_v9, 4  ;;  %v687_v22 = vrot.slane %v685_v7, 4  ;;  %v4429_v58 = vld [vmem:[%s3935_s23 + $0x80] sm:$0xf]  ;;  %v1391_v28 = vld [vmem:[#allocation2 + $0x130] sm:$0xff]  ;;  %v690_v49 = vrot.slane %v688_v14, 5  ;;  %2727 = vmatmul.mubr.bf16.gmra.mxu1 %v3803_v44 }
  0xa8   : > { %v677_v38 = vor.u32 %v676_v13, %v673_v4  ;;  %v1090_v32 = vsel %vm3961_vm5, %v1085_v26, %v1089_v59  ;;  %v696_v2 = vrot.slane %v694_v18, 5  ;;  %v3059_v19 = vrot.slane %v4078_v48, 9  ;;  %v4436_v51 = vld [vmem:[%s3935_s23 + $0x7c] sm:$0x1]  ;;  %961 = vst [vmem:[#allocation2 + $0x1c8] sm:$0xf] %v4429_v58 }
  0xa9   : > { %v1104_v25 = vsel %vm3961_vm5, %v1099_v31, %v1103_v61  ;;  %1213 = vst [vmem:[#allocation2 + $0x13c] sm:$0xf] %v1090_v32  ;;  %v860_v24 = vrot.slane %v4390_v50, 5  ;;  %v3060_v15 = vrot.slane %v4081_v53, 9  ;;  %v4444_v42 = vld [vmem:[%s3935_s23 + $0x88] sm:$0xf]  ;;  %v691_v48 = vor.u32 %v690_v49, %v687_v22 }
  0xaa   : > { %v678_v40 = vrot.slane %v677_v38, 4  ;;  %v1396_v3 = vld [vmem:[#allocation2 + $0x154] sm:$0xff]  ;;  %1214 = vst [vmem:[#allocation2 + $0x160] sm:$0xf] %v1104_v25  ;;  %v864_v55 = vrot.slane %v4410_v47, 5  ;;  %v1106_v59 = vshrl.u32 %v4393_v12, 16 }
  0xab   : > { %v3805_v11 = vld [vmem:[#allocation2 + $0x134] ss:$36 sps:$4 sm:$0xff]   ;;  %v1109_v16 = vshll.u32 %v4393_v12, 16  ;;  %962 = vst [vmem:[#allocation2 + $0x1ec] sm:$0xf] %v4444_v42  ;;  %v3155_v27 = vcombine.low %v1391_v28, %v1396_v3  ;;  %v861_v53 = vsel %vm3943_vm4, %v3059_v19, %v860_v24  ;;  %v1115_v1 = vshll.u32 %v4426_v29, 16 }
  0xac   : > { %v683_v50 = vsel %vm3961_vm5, %v678_v40, %v682_v39  ;;  %2637 = vmatprep.mubr.bf16.mxu0 %v3805_v11  ;;  %v692_v61 = vrot.slane %v691_v48, 4  ;;  %v865_v47 = vsel %vm3943_vm4, %v3060_v15, %v864_v55  ;;  %908 = vst [vmem:[#allocation2 + $0x17c] sm:$0xf] %v861_v53  ;;  %v1108_v6 = vrot.slane %v1106_v59, 4  ;;  %v3042_v44 = vld [vmem:[%s3935_s23 + $0x7c] sm:$0x1] }
  0xad   : > { %780 = vst [vmem:[#allocation2 + $0x178] sm:$0xf] %v683_v50  ;;  %v1111_v57 = vrot.slane %v1109_v16, 5  ;;  %2638 = vmatmul.mubr.bf16.gmra.mxu0 %v3155_v27  ;;  %909 = vst [vmem:[#allocation2 + $0x1a0] sm:$0xf] %v865_v47  ;;  %v1117_v4 = vrot.slane %v1115_v1, 5 }
  0xae   : > { %v1120_v63 = vshrl.u32 %v4402_v52, 16  ;;  %v1123_v7 = vshll.u32 %v4402_v52, 16  ;;  %v1129_v9 = vshll.u32 %v4436_v51, 16  ;;  %v697_v13 = vsel %vm3961_vm5, %v692_v61, %v696_v2  ;;  %v4466_v26 = vld [vmem:[%s3935_s23 + $0x90] sm:$0xf] }
  0xaf   : > { %v1112_v14 = vor.u32 %v1111_v57, %v1108_v6  ;;  %v3108_v18 = vrot.slane %v4393_v12, 9  ;;  %v1295_v37 = vrot.slane %v4426_v29, 5  ;;  %781 = vst [vmem:[#allocation2 + $0x19c] sm:$0xf] %v697_v13  ;;  %v3109_v22 = vrot.slane %v4402_v52, 9 }
  0xb0   : > { %v1122_v31 = vrot.slane %v1120_v63, 4  ;;  %v1125_v38 = vrot.slane %v1123_v7, 5  ;;  %v1131_v39 = vrot.slane %v1129_v9, 5  ;;  %v3044_v28 = vld [vmem:[%s3935_s23 + $0x84] sm:$0x1]  ;;  %v1299_v49 = vrot.slane %v4436_v51, 5 }
  0xb1   : > { %963 = vst [vmem:[#allocation2 + $0x210] sm:$0xf] %v4466_v26  ;;  %v1113_v32 = vrot.slane %v1112_v14, 4  ;;  %v699_v12 = vshrl.u32 %v4101_v34, 16  ;;  %v702_v29 = vshll.u32 %v4101_v34, 16  ;;  %v708_v40 = vshll.u32 %v3042_v44, 16 }
  0xb2   : > { %v3807_v2 = vld [vmem:[#allocation2 + $0x13c] ss:$36 sps:$4 sm:$0xff]   ;;  %v1126_v25 = vor.u32 %v1125_v38, %v1122_v31  ;;  %v1296_v24 = vsel %vm3943_vm4, %v3108_v18, %v1295_v37  ;;  %v713_v48 = vshrl.u32 %v4105_v46, 16  ;;  %v4480_v55 = vld [vmem:[%s3935_s23 + $0x98] sm:$0xf]  ;;  %v716_v27 = vshll.u32 %v4105_v46, 16 }
  0xb3   : > { %v3809_v19 = vld [vmem:[#allocation2 + $0x138] ss:$36 sps:$4 sm:$0xff]   ;;  %v1118_v15 = vsel %vm3961_vm5, %v1113_v32, %v1117_v4  ;;  %v701_v3 = vrot.slane %v699_v12, 4  ;;  %v704_v11 = vrot.slane %v702_v29, 5  ;;  %1343 = vst [vmem:[#allocation2 + $0x188] sm:$0xf] %v1296_v24  ;;  %2734 = vmatprep.mubr.bf16.mxu1 %v3807_v2 }
  0xb4   : > { %v1127_v59 = vrot.slane %v1126_v25, 4  ;;  %1215 = vst [vmem:[#allocation2 + $0x184] sm:$0xf] %v1118_v15  ;;  %v710_v16 = vrot.slane %v708_v40, 5  ;;  %v722_v50 = vshll.u32 %v3044_v28, 16  ;;  %2735 = vmatmul.mubr.bf16.gmra.mxu1 %v3809_v19  ;;  %v1401_v53 = vld [vmem:[#allocation2 + $0x178] sm:$0xff] }
  0xb5   : > { %964 = vst [vmem:[#allocation2 + $0x234] sm:$0xf] %v4480_v55  ;;  %v705_v1 = vor.u32 %v704_v11, %v701_v3  ;;  %v715_v61 = vrot.slane %v713_v48, 4  ;;  %v3061_v47 = vrot.slane %v4101_v34, 9  ;;  %v868_v6 = vrot.slane %v3042_v44, 5 }
  0xb6   : > { %v4486_v57 = vld [vmem:[%s3935_s23 + $0x84] sm:$0x1]  ;;  %v1132_v4 = vsel %vm3961_vm5, %v1127_v59, %v1131_v39  ;;  %v718_v63 = vrot.slane %v716_v27, 5  ;;  %v724_v7 = vrot.slane %v722_v50, 5  ;;  %v3062_v9 = vrot.slane %v4105_v46, 9  ;;  %v1406_v14 = vld [vmem:[#allocation2 + $0x19c] sm:$0xff] }
  0xb7   : > { %v4492_v13 = vld [vmem:[%s3935_s23 + $0x8c] sm:$0x1]  ;;  %v3811_v18 = vld [vmem:[#allocation2 + $0x17c] ss:$36 sps:$4 sm:$0xff]   ;;  %1216 = vst [vmem:[#allocation2 + $0x1a8] sm:$0xf] %v1132_v4  ;;  %v869_v34 = vsel %vm3943_vm4, %v3061_v47, %v868_v6  ;;  %v3164_v38 = vcombine.low %v1401_v53, %v1406_v14 }
  0xb8   : > { %v706_v37 = vrot.slane %v705_v1, 4  ;;  %v872_v44 = vrot.slane %v3044_v28, 5  ;;  %v1134_v31 = vshrl.u32 %v4429_v58, 16  ;;  %v719_v32 = vor.u32 %v718_v63, %v715_v61  ;;  %910 = vst [vmem:[#allocation2 + $0x1c4] sm:$0xf] %v869_v34  ;;  %2645 = vmatprep.mubr.bf16.mxu0 %v3811_v18 }
  0xb9   : > { %v1137_v39 = vshll.u32 %v4429_v58, 16  ;;  %v1143_v46 = vshll.u32 %v4486_v57, 16  ;;  %v1148_v19 = vshrl.u32 %v4444_v42, 16  ;;  %v3046_v28 = vld [vmem:[%s3935_s23 + $0x8c] sm:$0x1]  ;;  %2646 = vmatmul.mubr.bf16.gmra.mxu0 %v3164_v38  ;;  %v1151_v15 = vshll.u32 %v4444_v42, 16 }
  0xba   : > { %v711_v12 = vsel %vm3961_vm5, %v706_v37, %v710_v16  ;;  %v873_v29 = vsel %vm3943_vm4, %v3062_v9, %v872_v44  ;;  %v1136_v2 = vrot.slane %v1134_v31, 4  ;;  %v720_v25 = vrot.slane %v719_v32, 4  ;;  %v3048_v61 = vld [vmem:[%s3935_s23 + $0x94] sm:$0x1]  ;;  %v3815_v9 = vld [vmem:[#allocation2 + $0x180] ss:$36 sps:$4 sm:$0xff]  }
  0xbb   : > { %782 = vst [vmem:[#allocation2 + $0x1c0] sm:$0xf] %v711_v12  ;;  %911 = vst [vmem:[#allocation2 + $0x1e8] sm:$0xf] %v873_v29  ;;  %v1139_v40 = vrot.slane %v1137_v39, 5  ;;  %v1145_v24 = vrot.slane %v1143_v46, 5 }
  0xbc   : > { %v1150_v3 = vrot.slane %v1148_v19, 4  ;;  %v1157_v11 = vshll.u32 %v4492_v13, 16  ;;  %v727_v48 = vshrl.u32 %v4124_v45, 16  ;;  %v730_v59 = vshll.u32 %v4124_v45, 16  ;;  %v4525_v12 = vld [vmem:[%s3935_s23 + $0x94] sm:$0x1] }
  0xbd   : > { %v725_v16 = vsel %vm3961_vm5, %v720_v25, %v724_v7  ;;  %v1140_v27 = vor.u32 %v1139_v40, %v1136_v2  ;;  %v1153_v50 = vrot.slane %v1151_v15, 5  ;;  %v736_v53 = vshll.u32 %v3046_v28, 16  ;;  %v4535_v15 = vld [vmem:[%s3935_s23 + $0x9c] sm:$0x1] }
  0xbe   : > { %783 = vst [vmem:[#allocation2 + $0x1e4] sm:$0xf] %v725_v16  ;;  %v1159_v1 = vrot.slane %v1157_v11, 5  ;;  %v729_v47 = vrot.slane %v727_v48, 4  ;;  %v732_v6 = vrot.slane %v730_v59, 5  ;;  %v741_v4 = vshrl.u32 %v4129_v54, 16 }
  0xbf   : > { %v3813_v63 = vld [vmem:[#allocation2 + $0x184] ss:$36 sps:$4 sm:$0xff]   ;;  %v1141_v14 = vrot.slane %v1140_v27, 4  ;;  %v1154_v18 = vor.u32 %v1153_v50, %v1150_v3  ;;  %v1300_v7 = vsel %vm3943_vm4, %v3109_v22, %v1299_v49  ;;  %v738_v34 = vrot.slane %v736_v53, 5 }
  0xc0   : > { %v733_v37 = vor.u32 %v732_v6, %v729_v47  ;;  %v743_v44 = vrot.slane %v741_v4, 4  ;;  %v744_v31 = vshll.u32 %v4129_v54, 16  ;;  %1344 = vst [vmem:[#allocation2 + $0x1ac] sm:$0xf] %v1300_v7  ;;  %2742 = vmatprep.mubr.bf16.mxu1 %v3813_v63  ;;  %v750_v39 = vshll.u32 %v3048_v61, 16 }
  0xc1   : > { %v1146_v38 = vsel %vm3961_vm5, %v1141_v14, %v1145_v24  ;;  %v1155_v32 = vrot.slane %v1154_v18, 4  ;;  %v3063_v51 = vrot.slane %v4124_v45, 9  ;;  %2743 = vmatmul.mubr.bf16.gmra.mxu1 %v3815_v9  ;;  %v876_v49 = vrot.slane %v3046_v28, 5  ;;  %v3837_v7 = vld [vmem:[%s3935_s23 + $0x14] sm:$0x1] }
  0xc2   : > { %1217 = vst [vmem:[#allocation2 + $0x1cc] sm:$0xf] %v1146_v38  ;;  %v734_v52 = vrot.slane %v733_v37, 4  ;;  %v746_v22 = vrot.slane %v744_v31, 5  ;;  %v3064_v46 = vrot.slane %v4129_v54, 9  ;;  %v1411_v29 = vld [vmem:[#allocation2 + $0x1c0] sm:$0xff] }
  0xc3   : > { %v1160_v2 = vsel %vm3961_vm5, %v1155_v32, %v1159_v1  ;;  %v752_v19 = vrot.slane %v750_v39, 5  ;;  %v880_v25 = vrot.slane %v3048_v61, 5  ;;  %v1162_v40 = vshrl.u32 %v4466_v26, 16  ;;  %v3817_v11 = vld [vmem:[#allocation2 + $0x1c4] ss:$36 sps:$4 sm:$0xff]  }
  0xc4   : > { %1218 = vst [vmem:[#allocation2 + $0x1f0] sm:$0xf] %v1160_v2  ;;  %v739_v45 = vsel %vm3961_vm5, %v734_v52, %v738_v34  ;;  %v747_v24 = vor.u32 %v746_v22, %v743_v44  ;;  %v877_v28 = vsel %vm3943_vm4, %v3063_v51, %v876_v49  ;;  %v1165_v54 = vshll.u32 %v4466_v26, 16  ;;  %2653 = vmatprep.mubr.bf16.mxu0 %v3817_v11  ;;  %v3838_v31 = vld [vmem:[%s3935_s23 + $0x1c] sm:$0x1] }
  0xc5   : > { %v1416_v3 = vld [vmem:[#allocation2 + $0x1e4] sm:$0xff]  ;;  %784 = vst [vmem:[#allocation2 + $0x208] sm:$0xf] %v739_v45  ;;  %v881_v48 = vsel %vm3943_vm4, %v3064_v46, %v880_v25  ;;  %912 = vst [vmem:[#allocation2 + $0x20c] sm:$0xf] %v877_v28  ;;  %v1164_v59 = vrot.slane %v1162_v40, 4 }
  0xc6   : > { %v1171_v16 = vshll.u32 %v4525_v12, 16  ;;  %v1176_v27 = vshrl.u32 %v4480_v55, 16  ;;  %v3173_v50 = vcombine.low %v1411_v29, %v1416_v3  ;;  %v748_v53 = vrot.slane %v747_v24, 4  ;;  %913 = vst [vmem:[#allocation2 + $0x230] sm:$0xf] %v881_v48 }
  0xc7   : > { %v1167_v1 = vrot.slane %v1165_v54, 5  ;;  %v1179_v61 = vshll.u32 %v4480_v55, 16  ;;  %v1185_v4 = vshll.u32 %v4535_v15, 16  ;;  %v3098_v63 = vrot.slane %v4147_v33, 9  ;;  %v3821_v49 = vld [vmem:[#allocation2 + $0x1c8] ss:$36 sps:$4 sm:$0xff]  }
  0xc8   : > { %v1173_v47 = vrot.slane %v1171_v16, 5  ;;  %v1178_v6 = vrot.slane %v1176_v27, 4  ;;  %2654 = vmatmul.mubr.bf16.gmra.mxu0 %v3173_v50  ;;  %v753_v9 = vsel %vm3961_vm5, %v748_v53, %v752_v19  ;;  %v1255_v37 = vrot.slane %v3837_v7, 5 }
  0xc9   : > { %v1168_v14 = vor.u32 %v1167_v1, %v1164_v59  ;;  %v1181_v18 = vrot.slane %v1179_v61, 5  ;;  %785 = vst [vmem:[#allocation2 + $0x22c] sm:$0xf] %v753_v9  ;;  %v1187_v34 = vrot.slane %v1185_v4, 5  ;;  %v3099_v44 = vrot.slane %v4151_v36, 9 }
  0xca   : > { %v1259_v38 = vrot.slane %v3838_v31, 5  ;;  %v3106_v32 = vrot.slane %v4332_v17, 9  ;;  %v1256_v33 = vsel %vm3943_vm4, %v3098_v63, %v1255_v37  ;;  %v1287_v52 = vrot.slane %v4366_v8, 5  ;;  %v3831_v1 = vld [vmem:[#allocation2 + $0x68] ss:$36 sps:$4 sm:$0xff]  }
  0xcb   : > { %v1169_v39 = vrot.slane %v1168_v14, 4  ;;  %v1182_v51 = vor.u32 %v1181_v18, %v1178_v6  ;;  %v3819_v22 = vld [vmem:[#allocation2 + $0x1cc] ss:$36 sps:$4 sm:$0xff]   ;;  %1333 = vst [vmem:[#allocation2 + $0x20] sm:$0xf] %v1256_v33  ;;  %v3107_v29 = vrot.slane %v4350_v43, 9 }
  0xcc   : > { %v1260_v46 = vsel %vm3943_vm4, %v3099_v44, %v1259_v38  ;;  %v1288_v17 = vsel %vm3943_vm4, %v3106_v32, %v1287_v52  ;;  %v1291_v19 = vrot.slane %v4377_v20, 5  ;;  %2750 = vmatprep.mubr.bf16.mxu1 %v3819_v22  ;;  %v3102_v8 = vrot.slane %v4229_v56, 9  ;;  %v1421_v45 = vld [vmem:[#allocation2 + $0x208] sm:$0xff] }
  0xcd   : > { %v1174_v36 = vsel %vm3961_vm5, %v1169_v39, %v1173_v47  ;;  %v1183_v2 = vrot.slane %v1182_v51, 4  ;;  %1334 = vst [vmem:[#allocation2 + $0x44] sm:$0xf] %v1260_v46  ;;  %1341 = vst [vmem:[#allocation2 + $0x140] sm:$0xf] %v1288_v17  ;;  %v1271_v25 = vrot.slane %v4246_v30, 5  ;;  %2751 = vmatmul.mubr.bf16.gmra.mxu1 %v3821_v49 }
  0xce   : > { %1219 = vst [vmem:[#allocation2 + $0x214] sm:$0xf] %v1174_v36  ;;  %v3103_v40 = vrot.slane %v4241_v23, 9  ;;  %v1275_v43 = vrot.slane %v4267_v60, 5  ;;  %v1292_v28 = vsel %vm3943_vm4, %v3107_v29, %v1291_v19  ;;  %v3110_v20 = vrot.slane %v4429_v58, 9 }
  0xcf   : > { %v1188_v24 = vsel %vm3961_vm5, %v1183_v2, %v1187_v34  ;;  %v1303_v54 = vrot.slane %v4486_v57, 5  ;;  %1342 = vst [vmem:[#allocation2 + $0x164] sm:$0xf] %v1292_v28  ;;  %v1272_v56 = vsel %vm3943_vm4, %v3102_v8, %v1271_v25  ;;  %v3111_v30 = vrot.slane %v4444_v42, 9  ;;  %v3823_v3 = vld [vmem:[#allocation2 + $0x20c] ss:$36 sps:$4 sm:$0xff]  }
  0xd0   : > { %1220 = vst [vmem:[#allocation2 + $0x238] sm:$0xf] %v1188_v24  ;;  %v1276_v23 = vsel %vm3943_vm4, %v3103_v40, %v1275_v43  ;;  %v1307_v62 = vrot.slane %v4492_v13, 5  ;;  %v1426_v60 = vld [vmem:[#allocation2 + $0x22c] sm:$0xff]  ;;  %1337 = vst [vmem:[#allocation2 + $0xb0] sm:$0xf] %v1272_v56  ;;  %2661 = vmatprep.mubr.bf16.mxu0 %v3823_v3 }
  0xd1   : > { %1338 = vst [vmem:[#allocation2 + $0xd4] sm:$0xf] %v1276_v23  ;;  %v1304_v58 = vsel %vm3943_vm4, %v3110_v20, %v1303_v54  ;;  %v3104_v57 = vrot.slane %v4282_v10, 9  ;;  %v1279_v11 = vrot.slane %v4310_v5, 5  ;;  %v3105_v48 = vrot.slane %v4298_v35, 9 }
  0xd2   : > { %v3182_v59 = vcombine.low %v1421_v45, %v1426_v60  ;;  %v1308_v16 = vsel %vm3943_vm4, %v3111_v30, %v1307_v62  ;;  %1345 = vst [vmem:[#allocation2 + $0x1d0] sm:$0xf] %v1304_v58  ;;  %v1283_v42 = vrot.slane %v4318_v21, 5  ;;  %v3112_v13 = vrot.slane %v4466_v26, 9  ;;  %v3832_v47 = vld [vmem:[#allocation2 + $0x188] ss:$36 sps:$4 sm:$0xff]  }
  0xd3   : > { %1346 = vst [vmem:[#allocation2 + $0x1f4] sm:$0xf] %v1308_v16  ;;  %v1280_v27 = vsel %vm3943_vm4, %v3104_v57, %v1279_v11  ;;  %v1311_v10 = vrot.slane %v4525_v12, 5  ;;  %v3113_v5 = vrot.slane %v4480_v55, 9  ;;  %v1315_v35 = vrot.slane %v4535_v15, 5 }
  0xd4   : > { %2662 = vmatmul.mubr.bf16.gmra.mxu0 %v3182_v59  ;;  %v3829_v50 = vld [vmem:[#allocation2 + $0x20] ss:$36 sps:$4 sm:$0xff]   ;;  %v1284_v53 = vsel %vm3943_vm4, %v3105_v48, %v1283_v42  ;;  %1339 = vst [vmem:[#allocation2 + $0xf8] sm:$0xf] %v1280_v27  ;;  %v3827_v12 = vld [vmem:[#allocation2 + $0x210] ss:$36 sps:$4 sm:$0xff]  }
  0xd5   : > { %1340 = vst [vmem:[#allocation2 + $0x11c] sm:$0xf] %v1284_v53  ;;  %v1312_v21 = vsel %vm3943_vm4, %v3112_v13, %v1311_v10  ;;  %v1316_v26 = vsel %vm3943_vm4, %v3113_v5, %v1315_v35  ;;  %3631 = vmatprep.mubr.bf16.mxu0 %v3829_v50 }
  0xd6   : > { %1347 = vst [vmem:[#allocation2 + $0x218] sm:$0xf] %v1312_v21  ;;  %1348 = vst [vmem:[#allocation2 + $0x23c] sm:$0xf] %v1316_v26  ;;  %v3830_v15 = vld [vmem:[#allocation2 + $0x140] ss:$36 sps:$4 sm:$0xff]  }
  0xd7   : > { %v3825_v55 = vld [vmem:[#allocation2 + $0x214] ss:$36 sps:$4 sm:$0xff]  }
  0xd8   : > { %2758 = vmatprep.mubr.bf16.mxu1 %v3825_v55  ;;  %v3833_v61 = vld [vmem:[#allocation2 + $0xb0] ss:$36 sps:$4 sm:$0xff]  }
  0xd9   : > { %2759 = vmatmul.mubr.bf16.gmra.mxu1 %v3827_v12 }
  0xda   : > { %3639 = vmatprep.mubr.bf16.mxu1 %v3830_v15  ;;  %v3834_v6 = vld [vmem:[#allocation2 + $0x1d0] ss:$36 sps:$4 sm:$0xff]  }
  0xdc   : > { %3632 = vmatmul.mubr.bf16.vlgmr.msra.gmra.mxu0 %v3831_v1  ;;  %v3835_v4 = vld [vmem:[#allocation2 + $0xf8] ss:$36 sps:$4 sm:$0xff]  }
  0xdd   : > { %3635 = vmatprep.mubr.bf16.mxu0 %v3833_v61  ;;  %v3836_v41 = vld [vmem:[#allocation2 + $0x218] ss:$36 sps:$4 sm:$0xff]  }
  0xe1   : > { %3640 = vmatmul.mubr.bf16.vlgmr.msra.gmra.mxu1 %v3832_v47 }
  0xe2   : > { %3643 = vmatprep.mubr.bf16.mxu1 %v3834_v6 }
  0xe4   : > { %3636 = vmatmul.mubr.bf16.gmra.mxu0 %v3835_v4 }
  0xe9   : > { %3644 = vmatmul.mubr.bf16.gmra.mxu1 %v3836_v41 }
  0xf2   : > { %v3359_v14 = vpop.f32.mrf.mxu0 }
  0xf3   : > { %v3423_v63 = vpop.f32.mrf.mxu1 }
  0xf4   : > { %v3360_v37 = vpop.f32.mrf.mxu0 }
  0xf5   : > { %v3424_v9 = vpop.f32.mrf.mxu1  ;;  %v3361_v34 = vadd.f32 %v3360_v37, %v3359_v14 }
  0xf6   : > { %v3425_v18 = vadd.f32 %v3424_v9, %v3423_v63  ;;  %v3362_v31 = vpop.f32.mrf.mxu0 }
  0xf7   : > { %v3426_v7 = vpop.f32.mrf.mxu1  ;;  %v2414_v32 = vadd.f32 %v3361_v34, %v4754_v0 }
  0xf8   : > { %v3363_v39 = vpop.f32.mrf.mxu0 }
  0xf9   : > { %v3427_v44 = vpop.f32.mrf.mxu1  ;;  %v4599_v51 = vadd.f32 %v3425_v18, %v2414_v32  ;;  %v3364_v33 = vadd.f32 %v3363_v39, %v3362_v31 }
  0xfa   : > { %v3428_v38 = vadd.f32 %v3427_v44, %v3426_v7 }
  0xfb   : > { %v3429_v52 = vpop.f32.mrf.mxu1  ;;  %v2417_v22 = vadd.f32 %v3364_v33, %v4754_v0 }
  0xfd   : > { %v3430_v49 = vpop.f32.mrf.mxu1  ;;  %v4602_v36 = vadd.f32 %v3428_v38, %v2417_v22 }
  0xfe   : > { %v3431_v29 = vadd.f32 %v3430_v49, %v3429_v52 }
  0xff   : > { %v3432_v2 = vpop.f32.mrf.mxu1 }
 0x100   : > { %v3365_v46 = vpop.f32.mrf.mxu0 }
 0x101   : > { %v3433_v8 = vpop.f32.mrf.mxu1 }
 0x102   : > { %v3366_v17 = vpop.f32.mrf.mxu0  ;;  %v3434_v40 = vadd.f32 %v3433_v8, %v3432_v2 }
 0x103   : > { %v3367_v19 = vadd.f32 %v3366_v17, %v3365_v46  ;;  %v3435_v20 = vpop.f32.mrf.mxu1 }
 0x104   : > { %v3368_v25 = vpop.f32.mrf.mxu0 }
 0x105   : > { %v2422_v43 = vadd.f32 %v3367_v19, %v4754_v0  ;;  %v3436_v23 = vpop.f32.mrf.mxu1 }
 0x106   : > { %v3369_v45 = vpop.f32.mrf.mxu0  ;;  %v3437_v62 = vadd.f32 %v3436_v23, %v3435_v20 }
 0x107   : > { %v4605_v24 = vadd.f32 %v3431_v29, %v2422_v43  ;;  %v3370_v28 = vadd.f32 %v3369_v45, %v3368_v25  ;;  %v3438_v3 = vpop.f32.mrf.mxu1 }
 0x108   : > { %v3371_v56 = vpop.f32.mrf.mxu0 }
 0x109   : > { %v2425_v54 = vadd.f32 %v3370_v28, %v4754_v0  ;;  %v3439_v11 = vpop.f32.mrf.mxu1 }
 0x10a   : > { %v3372_v60 = vpop.f32.mrf.mxu0  ;;  %v3440_v59 = vadd.f32 %v3439_v11, %v3438_v3 }
 0x10b   : > { %v4608_v30 = vadd.f32 %v3434_v40, %v2425_v54  ;;  %v3373_v58 = vadd.f32 %v3372_v60, %v3371_v56  ;;  %v3441_v27 = vpop.f32.mrf.mxu1 }
 0x10c   : > { %v3374_v57 = vpop.f32.mrf.mxu0 }
 0x10d   : > { %v2430_v48 = vadd.f32 %v3373_v58, %v4754_v0  ;;  %v3442_v5 = vpop.f32.mrf.mxu1 }
 0x10e   : > { %v3375_v16 = vpop.f32.mrf.mxu0  ;;  %v3443_v53 = vadd.f32 %v3442_v5, %v3441_v27 }
 0x10f   : > { %v4611_v42 = vadd.f32 %v3437_v62, %v2430_v48  ;;  %v3376_v13 = vadd.f32 %v3375_v16, %v3374_v57  ;;  %v3444_v21 = vpop.f32.mrf.mxu1 }
 0x110   : > { %v3377_v50 = vpop.f32.mrf.mxu0 }
 0x111   : > { %v2433_v10 = vadd.f32 %v3376_v13, %v4754_v0  ;;  %v3445_v55 = vpop.f32.mrf.mxu1 }
 0x112   : > { %v3378_v26 = vpop.f32.mrf.mxu0  ;;  %v3446_v15 = vadd.f32 %v3445_v55, %v3444_v21 }
 0x113   : > { %v4614_v35 = vadd.f32 %v3440_v59, %v2433_v10  ;;  %v3379_v1 = vadd.f32 %v3378_v26, %v3377_v50 }
 0x114   : > { %v3380_v12 = vpop.f32.mrf.mxu0  ;;  %v3447_v41 = vpop.f32.mrf.mxu1 }
 0x115   : > { %v2438_v61 = vadd.f32 %v3379_v1, %v4754_v0 }
 0x116   : > { %v3381_v47 = vpop.f32.mrf.mxu0  ;;  %v3448_v9 = vpop.f32.mrf.mxu1 }
 0x117   : > { %v4617_v6 = vadd.f32 %v3443_v53, %v2438_v61  ;;  %v3382_v4 = vadd.f32 %v3381_v47, %v3380_v12  ;;  %v3449_v18 = vadd.f32 %v3448_v9, %v3447_v41 }
 0x118   : > { %v3383_v14 = vpop.f32.mrf.mxu0  ;;  %v3450_v37 = vpop.f32.mrf.mxu1 }
 0x119   : > { %v2441_v63 = vadd.f32 %v3382_v4, %v4754_v0 }
 0x11a   : > { %v3384_v34 = vpop.f32.mrf.mxu0  ;;  %v3451_v31 = vpop.f32.mrf.mxu1 }
 0x11b   : > { %v4620_v7 = vadd.f32 %v3446_v15, %v2441_v63  ;;  %v3385_v44 = vadd.f32 %v3384_v34, %v3383_v14  ;;  %v3452_v32 = vadd.f32 %v3451_v31, %v3450_v37 }
 0x11c   : > { %v3386_v38 = vpop.f32.mrf.mxu0 }
 0x11d   : > { %4759 = vst [vmem:[#allocation10_spill] sm:$0xff] %v4620_v7  ;;  %v2446_v39 = vadd.f32 %v3385_v44, %v4754_v0 }
 0x11e   : > { %v3387_v33 = vpop.f32.mrf.mxu0 }
 0x11f   : > { %v4623_v52 = vadd.f32 %v3449_v18, %v2446_v39  ;;  %v3388_v22 = vadd.f32 %v3387_v33, %v3386_v38  ;;  %v3453_v49 = vpop.f32.mrf.mxu1 }
 0x121   : > { %v2449_v46 = vadd.f32 %v3388_v22, %v4754_v0  ;;  %v3454_v2 = vpop.f32.mrf.mxu1 }
 0x122   : > { %v3455_v19 = vadd.f32 %v3454_v2, %v3453_v49 }
 0x123   : > { %v3389_v29 = vpop.f32.mrf.mxu0  ;;  %v4626_v17 = vadd.f32 %v3452_v32, %v2449_v46  ;;  %v3456_v25 = vpop.f32.mrf.mxu1 }
 0x125   : > { %4760 = vst [vmem:[#allocation11_spill] sm:$0xff] %v4626_v17  ;;  %v3390_v8 = vpop.f32.mrf.mxu0  ;;  %v3457_v45 = vpop.f32.mrf.mxu1 }
 0x126   : > { %v3391_v40 = vadd.f32 %v3390_v8, %v3389_v29  ;;  %v3458_v20 = vadd.f32 %v3457_v45, %v3456_v25 }
 0x127   : > { %v3392_v43 = vpop.f32.mrf.mxu0 }
 0x128   : > { %v2454_v28 = vadd.f32 %v3391_v40, %v4754_v0 }
 0x129   : > { %v3393_v54 = vpop.f32.mrf.mxu0 }
 0x12a   : > { %v4629_v56 = vadd.f32 %v3455_v19, %v2454_v28  ;;  %v3394_v23 = vadd.f32 %v3393_v54, %v3392_v43  ;;  %v3459_v62 = vpop.f32.mrf.mxu1 }
 0x12c   : > { %4761 = vst [vmem:[#allocation12_spill] sm:$0xff] %v4629_v56  ;;  %v2457_v60 = vadd.f32 %v3394_v23, %v4754_v0  ;;  %v3460_v3 = vpop.f32.mrf.mxu1 }
 0x12d   : > { %v3395_v57 = vpop.f32.mrf.mxu0  ;;  %v3461_v11 = vadd.f32 %v3460_v3, %v3459_v62 }
 0x12e   : > { %v4632_v58 = vadd.f32 %v3458_v20, %v2457_v60  ;;  %v3462_v48 = vpop.f32.mrf.mxu1 }
 0x12f   : > { %v3396_v59 = vpop.f32.mrf.mxu0 }
 0x130   : > { %4762 = vst [vmem:[#allocation13_spill] sm:$0xff] %v4632_v58  ;;  %v3397_v16 = vadd.f32 %v3396_v59, %v3395_v57  ;;  %v3463_v13 = vpop.f32.mrf.mxu1 }
 0x131   : > { %v3398_v27 = vpop.f32.mrf.mxu0  ;;  %v3464_v10 = vadd.f32 %v3463_v13, %v3462_v48 }
 0x132   : > { %v2462_v5 = vadd.f32 %v3397_v16, %v4754_v0  ;;  %v3465_v26 = vpop.f32.mrf.mxu1 }
 0x133   : > { %v3399_v50 = vpop.f32.mrf.mxu0 }
 0x134   : > { %v4635_v53 = vadd.f32 %v3461_v11, %v2462_v5  ;;  %v3400_v21 = vadd.f32 %v3399_v50, %v3398_v27  ;;  %v3466_v55 = vpop.f32.mrf.mxu1 }
 0x135   : > { %v3467_v15 = vadd.f32 %v3466_v55, %v3465_v26 }
 0x136   : > { %4763 = vst [vmem:[#allocation14_spill] sm:$0xff] %v4635_v53  ;;  %v2465_v1 = vadd.f32 %v3400_v21, %v4754_v0  ;;  %v3468_v47 = vpop.f32.mrf.mxu1 }
 0x138   : > { %v3401_v12 = vpop.f32.mrf.mxu0  ;;  %v4638_v61 = vadd.f32 %v3464_v10, %v2465_v1  ;;  %v3469_v63 = vpop.f32.mrf.mxu1 }
 0x139   : > { %v3470_v14 = vadd.f32 %v3469_v63, %v3468_v47 }
 0x13a   : > { %4764 = vst [vmem:[#allocation15_spill] sm:$0xff] %v4638_v61  ;;  %v3402_v4 = vpop.f32.mrf.mxu0 }
 0x13b   : > { %v3403_v41 = vadd.f32 %v3402_v4, %v3401_v12 }
 0x13c   : > { %v3404_v9 = vpop.f32.mrf.mxu0 }
 0x13d   : > { %v2470_v18 = vadd.f32 %v3403_v41, %v4754_v0 }
 0x13e   : > { %v3405_v37 = vpop.f32.mrf.mxu0 }
 0x13f   : > { %v4641_v34 = vadd.f32 %v3467_v15, %v2470_v18  ;;  %v3406_v44 = vadd.f32 %v3405_v37, %v3404_v9 }
 0x140   : > { %v3487_v31 = vpop.f32.mrf.mxu0 }
 0x141   : > { %4765 = vst [vmem:[#allocation16_spill] sm:$0xff] %v4641_v34  ;;  %v2473_v38 = vadd.f32 %v3406_v44, %v4754_v0 }
 0x142   : > { %v3488_v32 = vpop.f32.mrf.mxu0 }
 0x143   : > { %v4644_v39 = vadd.f32 %v3470_v14, %v2473_v38  ;;  %v3489_v33 = vadd.f32 %v3488_v32, %v3487_v31 }
 0x144   : > { %v3490_v22 = vpop.f32.mrf.mxu0 }
 0x145   : > { %4766 = vst [vmem:[#allocation17_spill] sm:$0xff] %v4644_v39  ;;  %v4647_v46 = vadd.f32 %v3489_v33, %v4599_v51 }
 0x146   : > { %v3551_v49 = vpop.f32.mrf.mxu1  ;;  %v3491_v29 = vpop.f32.mrf.mxu0 }
 0x148   : > { %v3552_v2 = vpop.f32.mrf.mxu1  ;;  %v3493_v19 = vpop.f32.mrf.mxu0 }
 0x149   : > { %v3553_v58 = vadd.f32 %v3552_v2, %v3551_v49 }
 0x14a   : > { %v3554_v8 = vpop.f32.mrf.mxu1  ;;  %v3494_v25 = vpop.f32.mrf.mxu0 }
 0x14c   : > { %v3555_v40 = vpop.f32.mrf.mxu1  ;;  %v3496_v43 = vpop.f32.mrf.mxu0 }
 0x14d   : > { %v3556_v56 = vadd.f32 %v3555_v40, %v3554_v8 }
 0x14e   : > { %v3497_v28 = vpop.f32.mrf.mxu0 }
 0x14f   : > { %v4649_v45 = vpop.f32.mrf.mxu1 }
 0x151   : > { %v3558_v20 = vpop.f32.mrf.mxu1 }
 0x152   : > { %v3559_v49 = vadd.f32 %v3558_v20, %v4649_v45 }
 0x153   : > { %v4651_v54 = vpop.f32.mrf.mxu1 }
 0x154   : > { %v3499_v23 = vpop.f32.mrf.mxu0 }
 0x155   : > { %v3561_v60 = vpop.f32.mrf.mxu1 }
 0x156   : > { %v3500_v62 = vpop.f32.mrf.mxu0 }
 0x158   : > { %v3502_v3 = vpop.f32.mrf.mxu0 }
 0x15a   : > { %v3503_v57 = vpop.f32.mrf.mxu0 }
 0x15b   : > { %v4653_v51 = vpop.f32.mrf.mxu1 }
 0x15d   : > { %v4655_v11 = vpop.f32.mrf.mxu1 }
 0x15e   : > { %v3565_v40 = vadd.f32 %v4655_v11, %v4653_v51 }
 0x15f   : > { %v4657_v59 = vpop.f32.mrf.mxu1 }
 0x160   : > { %v3505_v48 = vpop.f32.mrf.mxu0 }
 0x161   : > { %v3567_v13 = vpop.f32.mrf.mxu1 }
 0x162   : > { %v3506_v16 = vpop.f32.mrf.mxu0 }
 0x163   : > { %v3507_v7 = vadd.f32 %v3506_v16, %v3505_v48  ;;  %v4782_v16 = vld [vmem:[#allocation13_spill] sm:$0xff] }
 0x164   : > { %v3508_v27 = vpop.f32.mrf.mxu0 }
 0x166   : > { %v3509_v5 = vpop.f32.mrf.mxu0 }
 0x167   : > { %v3569_v10 = vpop.f32.mrf.mxu1 }
 0x169   : > { %v3570_v50 = vpop.f32.mrf.mxu1 }
 0x16a   : > { %v3571_v20 = vadd.f32 %v3570_v50, %v3569_v10 }
 0x16b   : > { %v4659_v21 = vpop.f32.mrf.mxu1 }
 0x16c   : > { %4767 = vst [vmem:[#allocation18_spill] sm:$0xff] %v4659_v21  ;;  %v3498_v21 = vadd.f32 %v3497_v28, %v3496_v43  ;;  %v3510_v28 = vadd.f32 %v3509_v5, %v3508_v27 }
 0x16d   : > { %v3511_v26 = vpop.f32.mrf.mxu0  ;;  %v4661_v55 = vpop.f32.mrf.mxu1 }
 0x16e   : > { %4768 = vst [vmem:[#allocation19_spill] sm:$0xff] %v4661_v55  ;;  %v3495_v55 = vadd.f32 %v3494_v25, %v3493_v19 }
 0x16f   : > { %v3512_v1 = vpop.f32.mrf.mxu0 }
 0x171   : > { %v3514_v12 = vpop.f32.mrf.mxu0 }
 0x173   : > { %v3515_v47 = vpop.f32.mrf.mxu0  ;;  %v4783_v10 = vld [vmem:[#allocation18_spill] sm:$0xff] }
 0x174   : > { %v4663_v15 = vpop.f32.mrf.mxu1 }
 0x175   : > { %4769 = vst [vmem:[#allocation20_spill] sm:$0xff] %v4663_v15  ;;  %v3501_v15 = vadd.f32 %v3500_v62, %v3499_v23  ;;  %v3562_v23 = vadd.f32 %v3561_v60, %v4651_v54  ;;  %v3568_v62 = vadd.f32 %v3567_v13, %v4657_v59  ;;  %v4784_v5 = vld [vmem:[#allocation19_spill] sm:$0xff] }
 0x176   : > { %v3576_v4 = vpop.f32.mrf.mxu1  ;;  %v3574_v50 = vadd.f32 %v4784_v5, %v4783_v10 }
 0x177   : > { %v2624_v2 = vadd.f32 %v3501_v15, %v4611_v42 }
 0x178   : > { %v4665_v41 = vpop.f32.mrf.mxu1 }
 0x179   : > { %4770 = vst [vmem:[#allocation21_spill] sm:$0xff] %v4665_v41  ;;  %v3517_v63 = vpop.f32.mrf.mxu0  ;;  %v3492_v41 = vadd.f32 %v3491_v29, %v3490_v22  ;;  %v2619_v22 = vadd.f32 %v3498_v21, %v4608_v30  ;;  %v3513_v29 = vadd.f32 %v3512_v1, %v3511_v26  ;;  %v4785_v21 = vld [vmem:[#allocation11_spill] sm:$0xff] }
 0x17a   : > { %v4667_v14 = vpop.f32.mrf.mxu1 }
 0x17b   : > { %v3518_v9 = vpop.f32.mrf.mxu0  ;;  %4771 = vst [vmem:[#allocation22_spill] sm:$0xff] %v4667_v14  ;;  %v2640_v42 = vadd.f32 %v3513_v29, %v4623_v52 }
 0x17c   : > { %v3519_v19 = vadd.f32 %v3518_v9, %v3517_v63  ;;  %v4781_v51 = vld [vmem:[#allocation20_spill] sm:$0xff] }
 0x17d   : > { %v3520_v18 = vpop.f32.mrf.mxu0  ;;  %v3577_v11 = vadd.f32 %v3576_v4, %v4781_v51 }
 0x17f   : > { %v3521_v31 = vpop.f32.mrf.mxu0  ;;  %v2737_v4 = vadd.f32 %v3577_v11, %v2640_v42  ;;  %v4797_v11 = vld [vmem:[#allocation15_spill] sm:$0xff] }
 0x181   : > { %v3581_v37 = vpop.f32.mrf.mxu1 }
 0x183   : > { %v3582_v44 = vpop.f32.mrf.mxu1 }
 0x184   : > { %v3583_v59 = vadd.f32 %v3582_v44, %v3581_v37 }
 0x185   : > { %v4669_v38 = vpop.f32.mrf.mxu1 }
 0x186   : > { %4772 = vst [vmem:[#allocation23_spill] sm:$0xff] %v4669_v38 }
 0x187   : > { %v3585_v33 = vpop.f32.mrf.mxu1 }
 0x188   : > { %v4671_v32 = vpop.f32.mrf.mxu0 }
 0x189   : > { %4773 = vst [vmem:[#allocation24_spill] sm:$0xff] %v4671_v32 }
 0x18a   : > { %v4673_v0 = vpop.f32.mrf.mxu0 }
 0x18b   : > { %4774 = vst [vmem:[#allocation25_spill] sm:$0xff] %v4673_v0  ;;  %v3504_v0 = vadd.f32 %v3503_v57, %v3502_v3  ;;  %v3516_v3 = vadd.f32 %v3515_v47, %v3514_v12 }
 0x18c   : > { %v4675_v39 = vpop.f32.mrf.mxu0 }
 0x18d   : > { %4775 = vst [vmem:[#allocation26_spill] sm:$0xff] %v4675_v39  ;;  %v4677_v61 = vpop.f32.mrf.mxu1  ;;  %v2611_v39 = vadd.f32 %v3492_v41, %v4602_v36  ;;  %v2627_v36 = vadd.f32 %v3504_v0, %v4614_v35  ;;  %v4779_v0 = vld [vmem:[#allocation12_spill] sm:$0xff]  ;;  %v2643_v26 = vadd.f32 %v3516_v3, %v4785_v21  ;;  %v4786_v12 = vld [vmem:[#allocation23_spill] sm:$0xff] }
 0x18e   : > { %4776 = vst [vmem:[#allocation27_spill] sm:$0xff] %v4677_v61  ;;  %v4679_v53 = vpop.f32.mrf.mxu0  ;;  %v2648_v35 = vadd.f32 %v3519_v19, %v4779_v0  ;;  %v3586_v15 = vadd.f32 %v3585_v33, %v4786_v12  ;;  %v4789_v19 = vld [vmem:[#allocation21_spill] sm:$0xff] }
 0x18f   : > { %4777 = vst [vmem:[#allocation28_spill] sm:$0xff] %v4679_v53  ;;  %v4681_v34 = vpop.f32.mrf.mxu1  ;;  %v2616_v53 = vadd.f32 %v3495_v55, %v4605_v24  ;;  %v2632_v24 = vadd.f32 %v3507_v7, %v4617_v6  ;;  %v2708_v30 = vadd.f32 %v3556_v56, %v2611_v39  ;;  %v2716_v6 = vadd.f32 %v3562_v23, %v2619_v22  ;;  %v4780_v7 = vld [vmem:[#allocation10_spill] sm:$0xff] }
 0x190   : > { %4778 = vst [vmem:[#allocation29_spill] sm:$0xff] %v4681_v34  ;;  %v2705_v34 = vadd.f32 %v3553_v58, %v4647_v46  ;;  %v3522_v58 = vadd.f32 %v3521_v31, %v3520_v18  ;;  %v2635_v60 = vadd.f32 %v3510_v28, %v4780_v7  ;;  %v2721_v56 = vadd.f32 %v3565_v40, %v2624_v2  ;;  %v4787_v18 = vld [vmem:[#allocation24_spill] sm:$0xff] }
 0x191   : > { %v4683_v14 = vpop.f32.mrf.mxu1  ;;  %v2713_v45 = vadd.f32 %v3559_v49, %v2616_v53  ;;  %v4704_v39 = vadd.f32 %v3568_v62, %v2627_v36  ;;  %v2729_v52 = vadd.f32 %v3571_v20, %v2632_v24  ;;  %v2745_v41 = vadd.f32 %v3583_v59, %v2648_v35  ;;  %v4790_v49 = vld [vmem:[#allocation22_spill] sm:$0xff]  ;;  %v4793_v62 = vld [vmem:[#allocation16_spill] sm:$0xff] }
 0x192   : > { %v2651_v53 = vadd.f32 %v3522_v58, %v4782_v16  ;;  %v4788_v37 = vld [vmem:[#allocation25_spill] sm:$0xff]  ;;  %v3580_v2 = vadd.f32 %v4790_v49, %v4789_v19  ;;  %v2732_v0 = vadd.f32 %v3574_v50, %v2635_v60  ;;  %v4794_v35 = vld [vmem:[#allocation14_spill] sm:$0xff] }
 0x193   : > { %v4685_v38 = vpop.f32.mrf.mxu1  ;;  %v3525_v44 = vadd.f32 %v4788_v37, %v4787_v18 }
 0x194   : > { %v3529_v17 = vpop.f32.mrf.mxu0  ;;  %v4791_v36 = vld [vmem:[#allocation26_spill] sm:$0xff]  ;;  %v2748_v33 = vadd.f32 %v3586_v15, %v2651_v53  ;;  %v2740_v42 = vadd.f32 %v3580_v2, %v2643_v26  ;;  %v4798_v53 = vld [vmem:[#allocation17_spill] sm:$0xff] }
 0x195   : > { %v4795_v7 = vld [vmem:[#allocation27_spill] sm:$0xff] }
 0x196   : > { %v3530_v32 = vpop.f32.mrf.mxu0 }
 0x197   : > { %v3531_v47 = vadd.f32 %v3530_v32, %v3529_v17 }
 0x198   : > { %v3532_v61 = vpop.f32.mrf.mxu0 }
 0x199   : > { %v4691_v25 = vpop.f32.mrf.mxu1  ;;  %v2664_v3 = vadd.f32 %v3531_v47, %v4793_v62 }
 0x19a   : > { %v3533_v43 = vpop.f32.mrf.mxu0 }
 0x19b   : > { %v3594_v46 = vpop.f32.mrf.mxu1  ;;  %v3534_v23 = vadd.f32 %v3533_v43, %v3532_v61 }
 0x19c   : > { %v3633_v8 = vpop.f32.mrf.mxu0  ;;  %v3595_v16 = vadd.f32 %v3594_v46, %v4691_v25 }
 0x19d   : > { %v3596_v57 = vpop.f32.mrf.mxu1  ;;  %v2810_v48 = vadd.f32 %v3633_v8, %v2713_v45 }
 0x19e   : > { %v2801_v54 = vpop.f32.mrf.mxu0 }
 0x19f   : > { %v3597_v13 = vpop.f32.mrf.mxu1  ;;  %v2802_v1 = vadd.f32 %v2801_v54, %v2705_v34  ;;  %v2866_v31 = vmax.f32 %v2810_v48, 0.0  ;;  %v4792_v34 = vld [vmem:[#allocation28_spill] sm:$0xff]  ;;  %v2656_v54 = vadd.f32 %v3525_v44, %v4794_v35  ;;  %v4796_v48 = vld [vmem:[#allocation29_spill] sm:$0xff] }
 0x1a0   : > { %v3634_v27 = vpop.f32.mrf.mxu0  ;;  %v3528_v28 = vadd.f32 %v4792_v34, %v4791_v36  ;;  %v3589_v51 = vadd.f32 %v4796_v48, %v4795_v7 }
 0x1a1   : > { %v2813_v55 = vadd.f32 %v3634_v27, %v2716_v6  ;;  %v3641_v63 = vpop.f32.mrf.mxu1  ;;  %v2864_v58 = vmax.f32 %v2802_v1, 0.0  ;;  %v2667_v27 = vadd.f32 %v3534_v23, %v4798_v53  ;;  %v3598_v1 = vadd.f32 %v3597_v13, %v3596_v57 }
 0x1a2   : > { %v2804_v9 = vpop.f32.mrf.mxu0  ;;  %v2842_v32 = vadd.f32 %v3641_v63, %v2745_v41  ;;  %v2659_v59 = vadd.f32 %v3528_v28, %v4797_v11 }
 0x1a3   : > { %v2867_v22 = vmax.f32 %v2813_v55, 0.0  ;;  %v2805_v29 = vadd.f32 %v2804_v9, %v2708_v30  ;;  %v2833_v24 = vpop.f32.mrf.mxu1  ;;  %v2753_v9 = vadd.f32 %v3589_v51, %v2656_v54 }
 0x1a4   : > { %v3637_v17 = vpop.f32.mrf.mxu0  ;;  %v2834_v45 = vadd.f32 %v2833_v24, %v2737_v4  ;;  %v2874_v5 = vmax.f32 %v2842_v32, 0.0  ;;  %v3592_v4 = vadd.f32 %v4685_v38, %v4683_v14 }
 0x1a5   : > { %v3304_v8 = vpack.c.bf16 %v2867_v22, %v2866_v31  ;;  %v2865_v40 = vmax.f32 %v2805_v29, 0.0  ;;  %v3642_v20 = vpop.f32.mrf.mxu1  ;;  %v2826_v6 = vadd.f32 %v3637_v17, %v2729_v52  ;;  %v2761_v52 = vadd.f32 %v3595_v16, %v2664_v3 }
 0x1a6   : > { %v2817_v30 = vpop.f32.mrf.mxu0  ;;  %v2845_v61 = vadd.f32 %v3642_v20, %v2748_v33  ;;  %v2872_v55 = vmax.f32 %v2834_v45, 0.0  ;;  %v2756_v14 = vadd.f32 %v3592_v4, %v2659_v59 }
 0x1a7   : > { %3336 = vst [vmem:[%s4721_s25 + $0x8] sm:$0xff] %v3304_v8   ;;  %v3299_v43 = vpack.c.bf16 %v2865_v40, %v2864_v58  ;;  %v2836_v60 = vpop.f32.mrf.mxu1  ;;  %v2818_v15 = vadd.f32 %v2817_v30, %v2721_v56  ;;  %v2870_v25 = vmax.f32 %v2826_v6, 0.0  ;;  %v2764_v56 = vadd.f32 %v3598_v1, %v2667_v27 }
 0x1a8   : > { %v3638_v10 = vpop.f32.mrf.mxu0  ;;  %v2875_v50 = vmax.f32 %v2845_v61, 0.0  ;;  %v2837_v21 = vadd.f32 %v2836_v60, %v2740_v42 }
 0x1a9   : > { %3300 = vst [vmem:[%s4721_s25] sm:$0xff] %v3299_v43   ;;  %v2829_v26 = vadd.f32 %v3638_v10, %v2732_v0  ;;  %v3645_v12 = vpop.f32.mrf.mxu1  ;;  %v2868_v31 = vmax.f32 %v2818_v15, 0.0 }
 0x1aa   : > { %v2820_v47 = vpop.f32.mrf.mxu0  ;;  %v3324_v41 = vpack.c.bf16 %v2875_v50, %v2874_v5  ;;  %v2873_v63 = vmax.f32 %v2837_v21, 0.0  ;;  %v2858_v13 = vadd.f32 %v3645_v12, %v2761_v52 }
 0x1ab   : > { %v2871_v46 = vmax.f32 %v2829_v26, 0.0  ;;  %v2849_v18 = vpop.f32.mrf.mxu1  ;;  %v2821_v37 = vadd.f32 %v2820_v47, %v4704_v39 }
 0x1ac   : > { %3340 = vst [vmem:[%s4721_s25 + $0x28] sm:$0xff] %v3324_v41   ;;  %v3319_v57 = vpack.c.bf16 %v2873_v63, %v2872_v55  ;;  %v2850_v19 = vadd.f32 %v2849_v18, %v2753_v9  ;;  %v2878_v36 = vmax.f32 %v2858_v13, 0.0 }
 0x1ad   : > { %v3314_v44 = vpack.c.bf16 %v2871_v46, %v2870_v25  ;;  %v3646_v22 = vpop.f32.mrf.mxu1  ;;  %v2869_v29 = vmax.f32 %v2821_v37, 0.0 }
 0x1ae   : > { %3339 = vst [vmem:[%s4721_s25 + $0x20] sm:$0xff] %v3319_v57   ;;  %v2861_v49 = vadd.f32 %v3646_v22, %v2764_v56  ;;  %v2876_v28 = vmax.f32 %v2850_v19, 0.0 }
 0x1af   : > { %3338 = vst [vmem:[%s4721_s25 + $0x18] sm:$0xff] %v3314_v44   ;;  %v3309_v38 = vpack.c.bf16 %v2869_v29, %v2868_v31  ;;  %v2852_v2 = vpop.f32.mrf.mxu1 }
 0x1b0   : > { %v2879_v39 = vmax.f32 %v2861_v49, 0.0  ;;  %v2853_v34 = vadd.f32 %v2852_v2, %v2756_v14 }
 0x1b1   : > { %3337 = vst [vmem:[%s4721_s25 + $0x10] sm:$0xff] %v3309_v38  }
 0x1b2   : > { %v3334_v23 = vpack.c.bf16 %v2879_v39, %v2878_v36  ;;  %v2877_v24 = vmax.f32 %v2853_v34, 0.0  ;;  %35 = sbr.rel (!%p33_p5) target bundleno = 16 (0x10), region = 47 }
 0x1b4   : > { %3342 = vst [vmem:[%s4721_s25 + $0x38] sm:$0xff] %v3334_v23   ;;  %v3329_v33 = vpack.c.bf16 %v2877_v24, %v2876_v28 }
 0x1b6   : > { %3341 = vst [vmem:[%s4721_s25 + $0x30] sm:$0xff] %v3329_v33  }
 0x1b7   :  { %3870 = shalt.err (!%p3867_p10)
}
 0x1b8   :  { %2974 = dma.vmem_to_hbm [thread:$0]  %s2969_s27, 2048, %s4751_s3, [#allocation5], %s3892_s15, %s3892_s15, %s3893_s16  }
 0x1b9   :  { %3885 = dma.done.wait [#allocation5], 2048  }
 0x1ba   :  { %3886 = vsyncadd [#allocation5], 4294965248 }
 0x1bb   :  { %2978 = vsyncpa [#allocation4], 1 }
 0x1bc   :  { %2979 = vsyncpa [#allocation5], 1 }

</bundles_post_ra>
